<compile_context>
chip_gen: v6e
topology: v6e:2x2x1
jax: 0.10.0
libtpu: 0.0.40
codegen_flags: <defaults>
</compile_context>

<pallas_src>
import functools

import jax
import jax.numpy as jnp
from jax.experimental import pallas as pl
from jax.experimental.pallas import tpu as pltpu

OUT_DIM = 9
N_META_FEATURES = 11          # 4 numeric cols + 7 one-hot 'site_' dummy columns
IMG_FEAT = 1280               # efficientnet_lite0 classifier.in_features
STEM_CH = 32                  # efficientnet_lite0 stem channels
OUT_PAD = 128                 # lane-dense head output width (sliced back to OUT_DIM)

_VMEM = pl.BlockSpec(memory_space=pltpu.MemorySpace.VMEM)


def _round_up(x, m):
    return (x + m - 1) // m * m


# ----------------------------------------------------------------------------
# Kernel 1: fused stem conv (3x3 / s2 / p1, as one K=48 matmul per row tile)
#           + ReLU6 + streaming global-avg-pool (MXU reduce into VMEM scratch)
#           + 32->1280 projection at the last tile.  Grid = (B, n_row_tiles).
# ----------------------------------------------------------------------------
def _stem_gap_proj_kernel(x_ref, w_ref, wp_ref, bp_ref, o_ref, pool_acc,
                          *, inv_count):
    """x_ref : (1, tile_m, kcol)  bf16  4-tap im2col rows (zero-padded past Ho*Wo)
       w_ref : (kcol, STEM_CH)    bf16  flattened 3x3/s2 stem weights
       wp_ref: (STEM_CH, IMG_FEAT) bf16 stand-in projection weights
       bp_ref: (1, IMG_FEAT)      f32   projection bias
       o_ref : (1, 1, IMG_FEAT)   bf16  pooled+projected image features
       pool_acc: (1, STEM_CH)     f32   streamed GAP accumulator (VMEM scratch)
    """
    t = pl.program_id(1)

    @pl.when(t == 0)
    def _():
        pool_acc[...] = jnp.zeros_like(pool_acc)

    # Stem conv for this row tile: single bf16 MXU matmul, f32 accumulate.
    y = jnp.dot(x_ref[0], w_ref[...], preferred_element_type=jnp.float32)
    y = jnp.clip(y, 0.0, 6.0).astype(jnp.bfloat16)            # ReLU6 (tile_m, 32)
    # Streaming GAP on the MXU (frees VPU/XLU slots); zero-padded rows add 0.
    ones = jnp.ones((1, y.shape[0]), jnp.bfloat16)
    pool_acc[...] += jnp.dot(ones, y, preferred_element_type=jnp.float32)

    @pl.when(t == pl.num_programs(1) - 1)
    def _():
        pooled = pool_acc[...] * inv_count                     # (1, 32) f32
        # TODO(synk): bf16 cast of the pooled mean loses ~8 mantissa bits;
        # acceptable for this stand-in projection.
        z = jnp.dot(pooled.astype(jnp.bfloat16), wp_ref[...],
                    preferred_element_type=jnp.float32) + bp_ref[...]
        o_ref[0] = jnp.clip(z, 0.0, 6.0).astype(o_ref.dtype)   # stand-in activation


# ----------------------------------------------------------------------------
# Kernel 2: fused meta MLP (Linear+BN+ReLU x2) + concat head (Linear 1408->9)
# ----------------------------------------------------------------------------
def _meta_head_kernel(xi_ref, xm_ref, w1_ref, b1_ref, g1_ref, be1_ref,
                      w2_ref, b2_ref, g2_ref, be2_ref, wfc_ref, bfc_ref,
                      o_ref, *, eps):
    # meta layer 1: Linear(n_meta -> 512) + BatchNorm1d (batch stats) + ReLU
    # (K=11 matmul kept in f32 — negligible cost, keeps raw meta precision)
    h = jnp.dot(xm_ref[...], w1_ref[...], preferred_element_type=jnp.float32)
    h = h + b1_ref[...]
    mu = jnp.mean(h, axis=0, keepdims=True)
    var = jnp.mean((h - mu) ** 2, axis=0, keepdims=True)
    h = (h - mu) * jax.lax.rsqrt(var + eps) * g1_ref[...] + be1_ref[...]
    h = jnp.maximum(h, 0.0)
    # Dropout(0.3): identity at inference.
    # meta layer 2: Linear(512 -> 128) on the MXU in bf16 + BatchNorm1d + ReLU
    m = jnp.dot(h.astype(jnp.bfloat16), w2_ref[...],
                preferred_element_type=jnp.float32) + b2_ref[...]
    mu2 = jnp.mean(m, axis=0, keepdims=True)
    var2 = jnp.mean((m - mu2) ** 2, axis=0, keepdims=True)
    m = (m - mu2) * jax.lax.rsqrt(var2 + eps) * g2_ref[...] + be2_ref[...]
    m = jnp.maximum(m, 0.0)
    # head: final_fc(concat(x_img, x_meta)); Dropout(0.5) identity.
    # fc-weight split via static ref slices (1280 is sublane-tile aligned).
    z = jnp.dot(xi_ref[...], wfc_ref[:IMG_FEAT, :],
                preferred_element_type=jnp.float32)
    z = z + jnp.dot(m.astype(jnp.bfloat16), wfc_ref[IMG_FEAT:, :],
                    preferred_element_type=jnp.float32)
    o_ref[...] = (z + bfc_ref[...]).astype(o_ref.dtype)
    # TODO(synk): batch-stat BN forces the whole batch resident; for very large
    # batch inference a two-pass (partial-stats, then normalize+head) split
    # over B-tiles would be required.


# ----------------------------------------------------------------------------
# Parameters
# ----------------------------------------------------------------------------
def init_params(key):
    ks = jax.random.split(key, 10)
    p = {}
    # stem conv 3x3, 3 -> 32 (weights ordered [kh, kw, cin, cout])
    p["w_stem"] = 0.1 * jax.random.normal(ks[0], (3, 3, 3, STEM_CH), jnp.float32)
    # stand-in projection to the 1280-dim effnet feature space
    p["w_proj"] = 0.05 * jax.random.normal(ks[1], (STEM_CH, IMG_FEAT), jnp.float32)
    p["b_proj"] = jnp.zeros((IMG_FEAT,), jnp.float32)
    # meta MLP
    p["w_m1"] = 0.05 * jax.random.normal(ks[2], (N_META_FEATURES, 512), jnp.float32)
    p["b_m1"] = jnp.zeros((512,), jnp.float32)
    p["g_m1"] = jnp.ones((512,), jnp.float32)
    p["be_m1"] = jnp.zeros((512,), jnp.float32)
    p["w_m2"] = 0.05 * jax.random.normal(ks[3], (512, 128), jnp.float32)
    p["b_m2"] = jnp.zeros((128,), jnp.float32)
    p["g_m2"] = jnp.ones((128,), jnp.float32)
    p["be_m2"] = jnp.zeros((128,), jnp.float32)
    # final fc: (1280 + 128) -> 9
    p["w_fc"] = 0.02 * jax.random.normal(ks[4], (IMG_FEAT + 128, OUT_DIM), jnp.float32)
    p["b_fc"] = jnp.zeros((OUT_DIM,), jnp.float32)
    return p


# ----------------------------------------------------------------------------
# Forward
# ----------------------------------------------------------------------------
@jax.jit
def blood_sweat_tears_forward(params, x_img_nchw, x_meta):
    B, C, H, W = x_img_nchw.shape
    # TODO(synk): assumes even H, W (standard 224x224 inputs); odd sizes unsupported.
    assert H % 2 == 0 and W % 2 == 0
    Ho, Wo = H // 2, W // 2
    hp2, wp2 = Ho + 1, Wo + 1
    kdim = 4 * C                  # space-to-depth channel dim
    kcol = 4 * kdim               # 4 conv taps concatenated -> contraction dim (48)

    # ---- image branch: build the 4-tap im2col in plain JAX (≈4x image bytes,
    # ~1.2 MB per 224x224 image in bf16 — negligible) ---------------------------
    x = jnp.transpose(x_img_nchw, (0, 2, 3, 1))                  # NCHW -> NHWC
    xp = jnp.pad(x, ((0, 0), (1, 1), (1, 1), (0, 0)))            # conv pad = 1
    xs = xp.reshape(B, hp2, 2, wp2, 2, C).transpose(0, 1, 3, 2, 4, 5)
    xs = xs.reshape(B, hp2, wp2, kdim)                           # space-to-depth by 2
    xcol = jnp.concatenate(                                      # 4 shifted taps -> K=48
        [xs[:, a:a + Ho, b:b + Wo, :] for a in range(2) for b in range(2)],
        axis=-1)
    M = Ho * Wo
    xcol = xcol.reshape(B, M, kcol)
    tile_m = min(1024, _round_up(M, 8))
    n_tiles = -(-M // tile_m)
    m_pad = n_tiles * tile_m
    if m_pad != M:                                               # zero rows -> 0 in GAP sum
        xcol = jnp.pad(xcol, ((0, 0), (0, m_pad - M), (0, 0)))
    xcol = xcol.astype(jnp.bfloat16)                             # bf16 halves DMA

    # re-pack stem weights to match the tap/channel concat order:
    # row index = tap(2a+b)*4C + p*2C + q*C + c, with kh=2a+p, kw=2b+q.
    w = params["w_stem"]                                         # (3,3,C,32)
    wpad = jnp.pad(w, ((0, 1), (0, 1), (0, 0), (0, 0)))          # (4,4,C,32)
    wm = wpad.reshape(2, 2, 2, 2, C, STEM_CH).transpose(0, 2, 1, 3, 4, 5)
    wm = wm.reshape(kcol, STEM_CH).astype(jnp.bfloat16)

    wproj = params["w_proj"].astype(jnp.bfloat16)
    bproj = params["b_proj"].reshape(1, IMG_FEAT)

    x_imgf = pl.pallas_call(
        functools.partial(_stem_gap_proj_kernel, inv_count=1.0 / M),
        out_shape=jax.ShapeDtypeStruct((B, 1, IMG_FEAT), jnp.bfloat16),
        grid=(B, n_tiles),
        in_specs=[
            pl.BlockSpec((1, tile_m, kcol), lambda b, t: (b, t, 0)),
            pl.BlockSpec((kcol, STEM_CH), lambda b, t: (0, 0)),
            pl.BlockSpec((STEM_CH, IMG_FEAT), lambda b, t: (0, 0)),
            pl.BlockSpec((1, IMG_FEAT), lambda b, t: (0, 0)),
        ],
        out_specs=pl.BlockSpec((1, 1, IMG_FEAT), lambda b, t: (b, 0, 0)),
        scratch_shapes=[pltpu.VMEM((1, STEM_CH), jnp.float32)],
        compiler_params=pltpu.CompilerParams(
            dimension_semantics=("parallel", "arbitrary")),   # batch || , row-tiles reduce
    )(xcol, wm, wproj, bproj)
    x_imgf = x_imgf.reshape(B, IMG_FEAT)                         # bf16 image features

    # ---- meta branch + head: one fused kernel --------------------------------
    # pad the 9-wide fc to a lane-dense 128-wide output; padded cols are zero.
    wfc = jnp.pad(params["w_fc"],
                  ((0, 0), (0, OUT_PAD - OUT_DIM))).astype(jnp.bfloat16)
    bfc = jnp.pad(params["b_fc"], (0, OUT_PAD - OUT_DIM)).reshape(1, OUT_PAD)
    w2 = params["w_m2"].astype(jnp.bfloat16)
    logits_pad = pl.pallas_call(
        functools.partial(_meta_head_kernel, eps=1e-5),
        out_shape=jax.ShapeDtypeStruct((B, OUT_PAD), jnp.float32),
        in_specs=[_VMEM] * 12,
        out_specs=_VMEM,
    )(x_imgf, x_meta,
      params["w_m1"], params["b_m1"].reshape(1, -1),
      params["g_m1"].reshape(1, -1), params["be_m1"].reshape(1, -1),
      w2, params["b_m2"].reshape(1, -1),
      params["g_m2"].reshape(1, -1), params["be_m2"].reshape(1, -1),
      wfc, bfc)
    return logits_pad[:, :OUT_DIM]


if __name__ == "__main__":
    key = jax.random.PRNGKey(0)
    k_img, k_meta, k_par = jax.random.split(key, 3)

    x_img = jax.random.normal(k_img, (2, 3, 16, 16), jnp.float32)   # NCHW, like PyTorch
    x_meta = jax.random.normal(k_meta, (2, N_META_FEATURES), jnp.float32)
    params = init_params(k_par)

    out = blood_sweat_tears_forward(params, x_img, x_meta)
    out = jax.block_until_ready(out)
    assert out.shape == (2, OUT_DIM) and out.dtype == jnp.float32
    print("KERNEL_OK")
</pallas_src>

<mosaic_0001>
module attributes {stable_mosaic.version = 11 : i64} {
  func.func @_stem_gap_proj_kernel(%arg0: i32, %arg1: i32, %arg2: memref<1x64x48xbf16, #tpu.memory_space<vmem>>, %arg3: memref<48x32xbf16, #tpu.memory_space<vmem>>, %arg4: memref<32x1280xbf16, #tpu.memory_space<vmem>>, %arg5: memref<1x1280xf32, #tpu.memory_space<vmem>>, %arg6: memref<1x1x1280xbf16, #tpu.memory_space<vmem>>, %arg7: memref<1x32xf32, #tpu.memory_space<vmem>>) attributes {dimension_semantics = [#tpu.dimension_semantics<parallel>, #tpu.dimension_semantics<arbitrary>], iteration_bounds = array<i64: 2, 1>, scalar_prefetch = 0 : i64, scratch_operands = 1 : i64, tpu.core_type = #tpu.core_type<tc>, window_params = [{transform_indices = @transform_0, window_bounds = array<i64: 1, 64, 48>}, {pipeline_mode = #tpu.pipeline_mode<synchronous>, transform_indices = @transform_1, window_bounds = array<i64: 48, 32>}, {pipeline_mode = #tpu.pipeline_mode<synchronous>, transform_indices = @transform_2, window_bounds = array<i64: 32, 1280>}, {pipeline_mode = #tpu.pipeline_mode<synchronous>, transform_indices = @transform_3, window_bounds = array<i64: 1, 1280>}, {transform_indices = @transform_4, window_bounds = array<i64: 1, 1, 1280>}]} {
    %c0_i32 = arith.constant 0 : i32
    %0 = arith.cmpi eq, %arg1, %c0_i32 : i32
    %1 = arith.extui %0 : i1 to i32
    %c0_i32_0 = arith.constant 0 : i32
    %2 = arith.cmpi ne, %1, %c0_i32_0 : i32
    scf.if %2 {
      %cst_15 = arith.constant 0.000000e+00 : f32
      %20 = vector.broadcast %cst_15 : f32 to vector<1x32xf32>
      %c0_16 = arith.constant 0 : index
      %c0_17 = arith.constant 0 : index
      %21 = vector.load %arg7[%c0_16, %c0_17] : memref<1x32xf32, #tpu.memory_space<vmem>>, vector<1x32xf32>
      tpu.vector_store %arg7[%c0_16, %c0_17], %20 {strides = array<i32>} : memref<1x32xf32, #tpu.memory_space<vmem>>, vector<1x32xf32>,
    } else {
    }
    %c0 = arith.constant 0 : index
    %c0_1 = arith.constant 0 : index
    %c0_2 = arith.constant 0 : index
    %3 = vector.load %arg2[%c0, %c0_1, %c0_2] : memref<1x64x48xbf16, #tpu.memory_space<vmem>>, vector<1x64x48xbf16>
    %4 = vector.shape_cast %3 : vector<1x64x48xbf16> to vector<64x48xbf16>
    %c0_3 = arith.constant 0 : index
    %c0_4 = arith.constant 0 : index
    %5 = vector.load %arg3[%c0_3, %c0_4] : memref<48x32xbf16, #tpu.memory_space<vmem>>, vector<48x32xbf16>
    %cst = arith.constant dense<0.000000e+00> : vector<64x32xf32>
    %6 = tpu.matmul %4, %5, %cst {dimension_numbers = #tpu.dot_dimension_numbers<[1], [0], [0], [1], [0, 0, 1, 1], [], []>} : vector<64x48xbf16>, vector<48x32xbf16>, vector<64x32xf32> -> vector<64x32xf32>
    %cst_5 = arith.constant 0.000000e+00 : f32
    %cst_6 = arith.constant 6.000000e+00 : f32
    %7 = vector.broadcast %cst_5 : f32 to vector<64x32xf32>
    %8 = arith.maximumf %7, %6 : vector<64x32xf32>
    %9 = vector.broadcast %cst_6 : f32 to vector<64x32xf32>
    %10 = arith.minimumf %9, %8 : vector<64x32xf32>
    %11 = arith.truncf %10 : vector<64x32xf32> to vector<64x32xbf16>
    %cst_7 = arith.constant 1.000000e+00 : bf16
    %12 = vector.broadcast %cst_7 : bf16 to vector<1x64xbf16>
    %c0_8 = arith.constant 0 : index
    %c0_9 = arith.constant 0 : index
    %13 = vector.load %arg7[%c0_8, %c0_9] : memref<1x32xf32, #tpu.memory_space<vmem>>, vector<1x32xf32>
    %cst_10 = arith.constant dense<0.000000e+00> : vector<1x32xf32>
    %14 = tpu.matmul %12, %11, %cst_10 {dimension_numbers = #tpu.dot_dimension_numbers<[1], [0], [0], [1], [0, 0, 1, 1], [], []>} : vector<1x64xbf16>, vector<64x32xbf16>, vector<1x32xf32> -> vector<1x32xf32>
    %15 = arith.addf %13, %14 : vector<1x32xf32>
    %c0_11 = arith.constant 0 : index
    %c0_12 = arith.constant 0 : index
    %16 = vector.load %arg7[%c0_11, %c0_12] : memref<1x32xf32, #tpu.memory_space<vmem>>, vector<1x32xf32>
    tpu.vector_store %arg7[%c0_11, %c0_12], %15 {strides = array<i32>} : memref<1x32xf32, #tpu.memory_space<vmem>>, vector<1x32xf32>,
    %c0_i32_13 = arith.constant 0 : i32
    %17 = arith.cmpi eq, %arg1, %c0_i32_13 : i32
    %18 = arith.extui %17 : i1 to i32
    %c0_i32_14 = arith.constant 0 : i32
    %19 = arith.cmpi ne, %18, %c0_i32_14 : i32
    scf.if %19 {
      %c0_15 = arith.constant 0 : index
      %c0_16 = arith.constant 0 : index
      %20 = vector.load %arg7[%c0_15, %c0_16] : memref<1x32xf32, #tpu.memory_space<vmem>>, vector<1x32xf32>
      %cst_17 = arith.constant 1.562500e-02 : f32
      %21 = vector.broadcast %cst_17 : f32 to vector<1x32xf32>
      %22 = arith.mulf %20, %21 : vector<1x32xf32>
      %23 = arith.truncf %22 : vector<1x32xf32> to vector<1x32xbf16>
      %c0_18 = arith.constant 0 : index
      %c0_19 = arith.constant 0 : index
      %24 = vector.load %arg4[%c0_18, %c0_19] : memref<32x1280xbf16, #tpu.memory_space<vmem>>, vector<32x1280xbf16>
      %cst_20 = arith.constant dense<0.000000e+00> : vector<1x1280xf32>
      %25 = tpu.matmul %23, %24, %cst_20 {dimension_numbers = #tpu.dot_dimension_numbers<[1], [0], [0], [1], [0, 0, 1, 1], [], []>} : vector<1x32xbf16>, vector<32x1280xbf16>, vector<1x1280xf32> -> vector<1x1280xf32>
      %c0_21 = arith.constant 0 : index
      %c0_22 = arith.constant 0 : index
      %26 = vector.load %arg5[%c0_21, %c0_22] : memref<1x1280xf32, #tpu.memory_space<vmem>>, vector<1x1280xf32>
      %27 = arith.addf %25, %26 : vector<1x1280xf32>
      %cst_23 = arith.constant 0.000000e+00 : f32
      %cst_24 = arith.constant 6.000000e+00 : f32
      %28 = vector.broadcast %cst_23 : f32 to vector<1x1280xf32>
      %29 = arith.maximumf %28, %27 : vector<1x1280xf32>
      %30 = vector.broadcast %cst_24 : f32 to vector<1x1280xf32>
      %31 = arith.minimumf %30, %29 : vector<1x1280xf32>
      %32 = arith.truncf %31 : vector<1x1280xf32> to vector<1x1280xbf16>
      %c0_25 = arith.constant 0 : index
      %c0_26 = arith.constant 0 : index
      %c0_27 = arith.constant 0 : index
      %33 = vector.load %arg6[%c0_25, %c0_26, %c0_27] : memref<1x1x1280xbf16, #tpu.memory_space<vmem>>, vector<1x1x1280xbf16>
      %34 = vector.shape_cast %33 : vector<1x1x1280xbf16> to vector<1x1280xbf16>
      %35 = vector.shape_cast %32 : vector<1x1280xbf16> to vector<1x1x1280xbf16>
      tpu.vector_store %arg6[%c0_25, %c0_26, %c0_27], %35 {strides = array<i32>} : memref<1x1x1280xbf16, #tpu.memory_space<vmem>>, vector<1x1x1280xbf16>,
    } else {
    }
    return
  }
  func.func @transform_0(%arg0: i32, %arg1: i32) -> (i32, i32, i32) {
    %c0_i32 = arith.constant 0 : i32
    %c0_i32_0 = arith.constant 0 : i32
    return %arg0, %arg1, %c0_i32 : i32, i32, i32
  }
  func.func @transform_1(%arg0: i32, %arg1: i32) -> (i32, i32) {
    %c0_i32 = arith.constant 0 : i32
    %c0_i32_0 = arith.constant 0 : i32
    %c0_i32_1 = arith.constant 0 : i32
    return %c0_i32, %c0_i32_0 : i32, i32
  }
  func.func @transform_2(%arg0: i32, %arg1: i32) -> (i32, i32) {
    %c0_i32 = arith.constant 0 : i32
    %c0_i32_0 = arith.constant 0 : i32
    %c0_i32_1 = arith.constant 0 : i32
    return %c0_i32, %c0_i32_0 : i32, i32
  }
  func.func @transform_3(%arg0: i32, %arg1: i32) -> (i32, i32) {
    %c0_i32 = arith.constant 0 : i32
    %c0_i32_0 = arith.constant 0 : i32
    %c0_i32_1 = arith.constant 0 : i32
    return %c0_i32, %c0_i32_0 : i32, i32
  }
  func.func @transform_4(%arg0: i32, %arg1: i32) -> (i32, i32, i32) {
    %c0_i32 = arith.constant 0 : i32
    %c0_i32_0 = arith.constant 0 : i32
    %c0_i32_1 = arith.constant 0 : i32
    return %arg0, %c0_i32, %c0_i32_0 : i32, i32, i32
  }
}

module attributes {stable_mosaic.version = 11 : i64} {
  func.func @_meta_head_kernel(%arg0: memref<2x1280xbf16, #tpu.memory_space<vmem>>, %arg1: memref<2x11xf32, #tpu.memory_space<vmem>>, %arg2: memref<11x512xf32, #tpu.memory_space<vmem>>, %arg3: memref<1x512xf32, #tpu.memory_space<vmem>>, %arg4: memref<1x512xf32, #tpu.memory_space<vmem>>, %arg5: memref<1x512xf32, #tpu.memory_space<vmem>>, %arg6: memref<512x128xbf16, #tpu.memory_space<vmem>>, %arg7: memref<1x128xf32, #tpu.memory_space<vmem>>, %arg8: memref<1x128xf32, #tpu.memory_space<vmem>>, %arg9: memref<1x128xf32, #tpu.memory_space<vmem>>, %arg10: memref<1408x128xbf16, #tpu.memory_space<vmem>>, %arg11: memref<1x128xf32, #tpu.memory_space<vmem>>, %arg12: memref<2x128xf32, #tpu.memory_space<vmem>>) attributes {dimension_semantics = [], scalar_prefetch = 0 : i64, scratch_operands = 0 : i64, tpu.core_type = #tpu.core_type<tc>} {
    %c0 = arith.constant 0 : index
    %c0_0 = arith.constant 0 : index
    %0 = vector.load %arg1[%c0, %c0_0] : memref<2x11xf32, #tpu.memory_space<vmem>>, vector<2x11xf32>
    %c0_1 = arith.constant 0 : index
    %c0_2 = arith.constant 0 : index
    %1 = vector.load %arg2[%c0_1, %c0_2] : memref<11x512xf32, #tpu.memory_space<vmem>>, vector<11x512xf32>
    %cst = arith.constant dense<0.000000e+00> : vector<2x512xf32>
    %2 = tpu.matmul %0, %1, %cst {dimension_numbers = #tpu.dot_dimension_numbers<[1], [0], [0], [1], [0, 0, 1, 1], [], []>} : vector<2x11xf32>, vector<11x512xf32>, vector<2x512xf32> -> vector<2x512xf32>
    %c0_3 = arith.constant 0 : index
    %c0_4 = arith.constant 0 : index
    %3 = vector.load %arg3[%c0_3, %c0_4] : memref<1x512xf32, #tpu.memory_space<vmem>>, vector<1x512xf32>
    %4 = vector.broadcast %3 : vector<1x512xf32> to vector<2x512xf32>
    %5 = arith.addf %2, %4 : vector<2x512xf32>
    %cst_5 = arith.constant dense<0.000000e+00> : vector<512xf32>
    %6 = vector.multi_reduction <add>, %5, %cst_5 [0] : vector<2x512xf32> to vector<512xf32>
    %7 = vector.shape_cast %6 : vector<512xf32> to vector<1x512xf32>
    %cst_6 = arith.constant 2.000000e+00 : f32
    %8 = vector.broadcast %cst_6 : f32 to vector<1x512xf32>
    %9 = arith.divf %7, %8 : vector<1x512xf32>
    %10 = vector.broadcast %9 : vector<1x512xf32> to vector<2x512xf32>
    %11 = arith.subf %5, %10 : vector<2x512xf32>
    %12 = arith.mulf %11, %11 : vector<2x512xf32>
    %cst_7 = arith.constant dense<0.000000e+00> : vector<512xf32>
    %13 = vector.multi_reduction <add>, %12, %cst_7 [0] : vector<2x512xf32> to vector<512xf32>
    %14 = vector.shape_cast %13 : vector<512xf32> to vector<1x512xf32>
    %cst_8 = arith.constant 2.000000e+00 : f32
    %15 = vector.broadcast %cst_8 : f32 to vector<1x512xf32>
    %16 = arith.divf %14, %15 : vector<1x512xf32>
    %17 = vector.broadcast %9 : vector<1x512xf32> to vector<2x512xf32>
    %18 = arith.subf %5, %17 : vector<2x512xf32>
    %cst_9 = arith.constant 9.99999974E-6 : f32
    %19 = vector.broadcast %cst_9 : f32 to vector<1x512xf32>
    %20 = arith.addf %16, %19 : vector<1x512xf32>
    %21 = math.rsqrt %20 : vector<1x512xf32>
    %22 = vector.broadcast %21 : vector<1x512xf32> to vector<2x512xf32>
    %23 = arith.mulf %18, %22 : vector<2x512xf32>
    %c0_10 = arith.constant 0 : index
    %c0_11 = arith.constant 0 : index
    %24 = vector.load %arg4[%c0_10, %c0_11] : memref<1x512xf32, #tpu.memory_space<vmem>>, vector<1x512xf32>
    %25 = vector.broadcast %24 : vector<1x512xf32> to vector<2x512xf32>
    %26 = arith.mulf %23, %25 : vector<2x512xf32>
    %c0_12 = arith.constant 0 : index
    %c0_13 = arith.constant 0 : index
    %27 = vector.load %arg5[%c0_12, %c0_13] : memref<1x512xf32, #tpu.memory_space<vmem>>, vector<1x512xf32>
    %28 = vector.broadcast %27 : vector<1x512xf32> to vector<2x512xf32>
    %29 = arith.addf %26, %28 : vector<2x512xf32>
    %cst_14 = arith.constant 0.000000e+00 : f32
    %30 = vector.broadcast %cst_14 : f32 to vector<2x512xf32>
    %31 = arith.maximumf %29, %30 : vector<2x512xf32>
    %32 = arith.truncf %31 : vector<2x512xf32> to vector<2x512xbf16>
    %c0_15 = arith.constant 0 : index
    %c0_16 = arith.constant 0 : index
    %33 = vector.load %arg6[%c0_15, %c0_16] : memref<512x128xbf16, #tpu.memory_space<vmem>>, vector<512x128xbf16>
    %cst_17 = arith.constant dense<0.000000e+00> : vector<2x128xf32>
    %34 = tpu.matmul %32, %33, %cst_17 {dimension_numbers = #tpu.dot_dimension_numbers<[1], [0], [0], [1], [0, 0, 1, 1], [], []>} : vector<2x512xbf16>, vector<512x128xbf16>, vector<2x128xf32> -> vector<2x128xf32>
    %c0_18 = arith.constant 0 : index
    %c0_19 = arith.constant 0 : index
    %35 = vector.load %arg7[%c0_18, %c0_19] : memref<1x128xf32, #tpu.memory_space<vmem>>, vector<1x128xf32>
    %36 = vector.broadcast %35 : vector<1x128xf32> to vector<2x128xf32>
    %37 = arith.addf %34, %36 : vector<2x128xf32>
    %cst_20 = arith.constant dense<0.000000e+00> : vector<128xf32>
    %38 = vector.multi_reduction <add>, %37, %cst_20 [0] : vector<2x128xf32> to vector<128xf32>
    %39 = vector.shape_cast %38 : vector<128xf32> to vector<1x128xf32>
    %cst_21 = arith.constant 2.000000e+00 : f32
    %40 = vector.broadcast %cst_21 : f32 to vector<1x128xf32>
    %41 = arith.divf %39, %40 : vector<1x128xf32>
    %42 = vector.broadcast %41 : vector<1x128xf32> to vector<2x128xf32>
    %43 = arith.subf %37, %42 : vector<2x128xf32>
    %44 = arith.mulf %43, %43 : vector<2x128xf32>
    %cst_22 = arith.constant dense<0.000000e+00> : vector<128xf32>
    %45 = vector.multi_reduction <add>, %44, %cst_22 [0] : vector<2x128xf32> to vector<128xf32>
    %46 = vector.shape_cast %45 : vector<128xf32> to vector<1x128xf32>
    %cst_23 = arith.constant 2.000000e+00 : f32
    %47 = vector.broadcast %cst_23 : f32 to vector<1x128xf32>
    %48 = arith.divf %46, %47 : vector<1x128xf32>
    %49 = vector.broadcast %41 : vector<1x128xf32> to vector<2x128xf32>
    %50 = arith.subf %37, %49 : vector<2x128xf32>
    %cst_24 = arith.constant 9.99999974E-6 : f32
    %51 = vector.broadcast %cst_24 : f32 to vector<1x128xf32>
    %52 = arith.addf %48, %51 : vector<1x128xf32>
    %53 = math.rsqrt %52 : vector<1x128xf32>
    %54 = vector.broadcast %53 : vector<1x128xf32> to vector<2x128xf32>
    %55 = arith.mulf %50, %54 : vector<2x128xf32>
    %c0_25 = arith.constant 0 : index
    %c0_26 = arith.constant 0 : index
    %56 = vector.load %arg8[%c0_25, %c0_26] : memref<1x128xf32, #tpu.memory_space<vmem>>, vector<1x128xf32>
    %57 = vector.broadcast %56 : vector<1x128xf32> to vector<2x128xf32>
    %58 = arith.mulf %55, %57 : vector<2x128xf32>
    %c0_27 = arith.constant 0 : index
    %c0_28 = arith.constant 0 : index
    %59 = vector.load %arg9[%c0_27, %c0_28] : memref<1x128xf32, #tpu.memory_space<vmem>>, vector<1x128xf32>
    %60 = vector.broadcast %59 : vector<1x128xf32> to vector<2x128xf32>
    %61 = arith.addf %58, %60 : vector<2x128xf32>
    %cst_29 = arith.constant 0.000000e+00 : f32
    %62 = vector.broadcast %cst_29 : f32 to vector<2x128xf32>
    %63 = arith.maximumf %61, %62 : vector<2x128xf32>
    %c0_30 = arith.constant 0 : index
    %c0_31 = arith.constant 0 : index
    %64 = vector.load %arg0[%c0_30, %c0_31] : memref<2x1280xbf16, #tpu.memory_space<vmem>>, vector<2x1280xbf16>
    %c0_32 = arith.constant 0 : index
    %c0_33 = arith.constant 0 : index
    %65 = vector.load %arg10[%c0_32, %c0_33] : memref<1408x128xbf16, #tpu.memory_space<vmem>>, vector<1280x128xbf16>
    %cst_34 = arith.constant dense<0.000000e+00> : vector<2x128xf32>
    %66 = tpu.matmul %64, %65, %cst_34 {dimension_numbers = #tpu.dot_dimension_numbers<[1], [0], [0], [1], [0, 0, 1, 1], [], []>} : vector<2x1280xbf16>, vector<1280x128xbf16>, vector<2x128xf32> -> vector<2x128xf32>
    %67 = arith.truncf %63 : vector<2x128xf32> to vector<2x128xbf16>
    %c1280 = arith.constant 1280 : index
    %c0_35 = arith.constant 0 : index
    %68 = vector.load %arg10[%c1280, %c0_35] : memref<1408x128xbf16, #tpu.memory_space<vmem>>, vector<128x128xbf16>
    %cst_36 = arith.constant dense<0.000000e+00> : vector<2x128xf32>
    %69 = tpu.matmul %67, %68, %cst_36 {dimension_numbers = #tpu.dot_dimension_numbers<[1], [0], [0], [1], [0, 0, 1, 1], [], []>} : vector<2x128xbf16>, vector<128x128xbf16>, vector<2x128xf32> -> vector<2x128xf32>
    %70 = arith.addf %66, %69 : vector<2x128xf32>
    %c0_37 = arith.constant 0 : index
    %c0_38 = arith.constant 0 : index
    %71 = vector.load %arg11[%c0_37, %c0_38] : memref<1x128xf32, #tpu.memory_space<vmem>>, vector<1x128xf32>
    %72 = vector.broadcast %71 : vector<1x128xf32> to vector<2x128xf32>
    %73 = arith.addf %70, %72 : vector<2x128xf32>
    %c0_39 = arith.constant 0 : index
    %c0_40 = arith.constant 0 : index
    %74 = vector.load %arg12[%c0_39, %c0_40] : memref<2x128xf32, #tpu.memory_space<vmem>>, vector<2x128xf32>
    tpu.vector_store %arg12[%c0_39, %c0_40], %73 {strides = array<i32>} : memref<2x128xf32, #tpu.memory_space<vmem>>, vector<2x128xf32>,
    return
  }
}

</mosaic_0001>

<bundles_post_ra>
// kernel: blood_sweat_tears_forward.2
= control target key start
LH: loop header
LB: loop body
LE: loop exit
PB: predicated region body
PF: predicated region fallthrough
CT: control target
= control target key end

     0   :  { %s1240_s15 = smov 0   ;;  %s1242_s16 = smov 0   ;;  %s1454_s0 = inlined_call_operand.vmem [shape: bf16[2,64,48], index: 0, kind: input, shape index: {}]   ;;  %s1455_s1 = inlined_call_operand.vmem [shape: bf16[48,32], index: 1, kind: input, shape index: {}]   ;;  %s1456_s2 = inlined_call_operand.vmem [shape: bf16[32,1280], index: 2, kind: input, shape index: {}]   ;;  %s1457_s3 = inlined_call_operand.vmem [shape: f32[1,1280], index: 3, kind: input, shape index: {}]   ;;  %s1458_s4 = inlined_call_operand.vmem [shape: bf16[2,1,1280], index: 4, kind: output, shape index: {}]  }
   0x1   :  { %s1244_s17 = smov 0  }
   0x2 LB: > { %s26_s18 = sadd.s32 1, %s1204_s16  ;;  %p1033_p0 = scmp.ge.s32.totalorder %s1208_s17, 1  ;;  %s1208_s17 = sphi %s1244_s17, %s14_s17   ;;  %s1204_s16 = sphi %s1242_s16, %s1474_s16   ;;  %s1200_s15 = sphi %s1240_s15, %s1473_s15  }
   0x3   : > { %p28_p1 = scmp.ge.s32.totalorder %s26_s18, 2  ;;  %p181_p2 = scmp.lt.s32.totalorder %s1208_s17, 3 }
   0x5   : > { %s1476_s18 = smov (%p28_p1, %s26_s18), 0  ;;  %p182_p3 = pnand %p1033_p0, %p181_p2 }
   0x6   : > { %p211_p4 = scmp.lt.s32.totalorder (!%p182_p3), %s1200_s15, 1 }
   0x7   : > { %185 = sbr.rel (%p182_p3) target bundleno = 683 (0x2ab), region = 36 }
   0xc   : > { %v1149_v0 = vld [vmem:[%s1455_s1 + $0x10] sm:$0xff]   ;;  %v1150_v1 = vld [vmem:[%s1455_s1 + $0x8] sm:$0xff]   ;;  %v1151_v2 = vld [vmem:[%s1455_s1] sm:$0xff]   ;;  %s1478_s15 = smov (!%p211_p4, %s1200_s15), 1  ;;  %vm284_vm0 = vcmask 392192   ;;  %v1210_v7 = vmov 0.0  }
   0xd   : > { %1093 = vmatprep.subr.bf16.mxu0 %v1149_v0  ;;  %s1080_s25 = sshll.u32 %s1478_s15, 5  ;;  %1107 = vmatprep.subr.bf16.mxu1 %v1210_v7  ;;  %vm1211_vm1 = vmmov 0   ;;  %vm230_vm2 = vcmask 253952   ;;  %vm383_vm3 = vcmask 523264   ;;  %v1212_v36 = vmov 1065369472  }
   0xe   : > { %1094 = vmatpush3.bf16.msra.mxu0 %v1149_v0  ;;  %s218_s28 = scalar_lea.vmem %s1454_s0, %s1080_s25  ;;  %1115 = vmatprep.mubr.msk.bf16.mxu1 %vm1211_vm1, %v1210_v7  ;;  %231 = vst.msk [vmem:[#allocation2] sm:$0x1] %vm230_vm2, %v1210_v7  ;;  %v1156_v37 = vld [vmem:[%s1456_s2 + $0x58] ss:$40 sps:$4 sm:$0xff]   ;;  %v1158_v38 = vld [vmem:[%s1456_s2 + $0x5c] ss:$40 sps:$4 sm:$0xff]  }
   0xf   : > { %1095 = vmatprep.subr.bf16.mxu0 %v1150_v1  ;;  %v1152_v3 = vld [vmem:[%s218_s28] sm:$0xff]   ;;  %v1153_v4 = vld [vmem:[%s218_s28 + $0x8] sm:$0xff]   ;;  %v1154_v5 = vld [vmem:[%s218_s28 + $0x10] sm:$0xff]   ;;  %v1213_v45 = vmov 0   ;;  %vm610_vm4 = vcmask 261120   ;;  %vm925_vm5 = vcmask 1040384  }
  0x10   : > { %1099 = vmatprep.mubr.msk.bf16.mxu0 %vm284_vm0, %v1152_v3  ;;  %v1155_v6 = vld [vmem:[%s218_s28 + $0x18] sm:$0xff]   ;;  %v1164_v41 = vld [vmem:[%s1456_s2 + $0x4] ss:$40 sps:$4 sm:$0xff]   ;;  %v1165_v42 = vld [vmem:[%s1456_s2 + $0x8] ss:$40 sps:$4 sm:$0xff]   ;;  %v560_v3 = vlaneseq  ;;  %vm928_vm7 = vcmask 1041409  }
  0x11   : > { %v1161_v39 = vld [vmem:[%s1456_s2 + $0x54] ss:$40 sps:$4 sm:$0xff]   ;;  %v1159_v40 = vld [vmem:[%s1456_s2 + $0x50] ss:$40 sps:$4 sm:$0xff]   ;;  %v1162_v44 = vld [vmem:[%s1456_s2] ss:$40 sps:$4 sm:$0xff]  }
  0x12   : > { %1096 = vmatpush3.bf16.msra.mxu0 %v1150_v1  ;;  %v1167_v43 = vld [vmem:[%s1456_s2 + $0xc] ss:$40 sps:$4 sm:$0xff]   ;;  %v1168_v56 = vld [vmem:[%s1456_s2 + $0x60] ss:$40 sps:$4 sm:$0xff]   ;;  %v1179_v60 = vld [vmem:[%s1456_s2 + $0x1c] ss:$40 sps:$4 sm:$0xff]  }
  0x13   : > { %1097 = vmatprep.subr.bf16.mxu0 %v1151_v2  ;;  %v1170_v46 = vld [vmem:[%s1456_s2 + $0x64] ss:$40 sps:$4 sm:$0xff]   ;;  %v1171_v57 = vld [vmem:[%s1456_s2 + $0x68] ss:$40 sps:$4 sm:$0xff]   ;;  %v1176_v59 = vld [vmem:[%s1456_s2 + $0x14] ss:$40 sps:$4 sm:$0xff]  }
  0x14   : > { %v1173_v47 = vld [vmem:[%s1456_s2 + $0x6c] ss:$40 sps:$4 sm:$0xff]   ;;  %v1174_v61 = vld [vmem:[%s1456_s2 + $0x10] ss:$40 sps:$4 sm:$0xff]   ;;  %vm926_vm6 = vsmask.f32 256 }
  0x15   : > { %v382_v48 = vld [vmem:[#allocation2] sm:$0x1]  ;;  %v1182_v63 = vld [vmem:[%s1456_s2 + $0x74] ss:$40 sps:$4 sm:$0xff]   ;;  %v1180_v0 = vld [vmem:[%s1456_s2 + $0x70] ss:$40 sps:$4 sm:$0xff]  }
  0x16   : > { %1098 = vmatpush3.bf16.msra.mxu0 %v1151_v2  ;;  %v1177_v62 = vld [vmem:[%s1456_s2 + $0x18] ss:$40 sps:$4 sm:$0xff]   ;;  %v1185_v1 = vld [vmem:[%s1456_s2 + $0x24] ss:$40 sps:$4 sm:$0xff]   ;;  %vm929_vm8 = vsmask.f32 1280  ;;  %vm1351_vm9 = vmand %vm925_vm5, %vm926_vm6 }
  0x17   : > { %667 = vmatprep.subr.bf16.mxu0 %v1158_v38  ;;  %v1183_v2 = vld [vmem:[%s1456_s2 + $0x20] ss:$40 sps:$4 sm:$0xff]   ;;  %vm1357_vm10 = vmand %vm928_vm7, %vm929_vm8  ;;  %vm932_vm11 = vcmask 1042434   ;;  %vm933_vm12 = vsmask.f32 2304  ;;  %vm936_vm15 = vcmask 1043459  }
  0x18   : > { %vm931_vm13 = vmor %vm1357_vm10, %vm1351_vm9  ;;  %vm944_vm7 = vcmask 1045509   ;;  %vm945_vm8 = vsmask.f32 5376  ;;  %s1119_s29 = smul.u32 10, %s1478_s15 }
  0x19   : > { %1100 = vmatmul.mubr.msk.bf16.vlgmr.msra.gmra.mxu0 %vm284_vm0, %v1153_v4  ;;  %v1340_v4 = vshrl.u32 %v560_v3, 7  ;;  %vm1367_vm14 = vmand %vm932_vm11, %vm933_vm12 }
  0x1a   : > { %1103 = vmatprep.mubr.msk.bf16.mxu0 %vm284_vm0, %v1154_v5  ;;  %668 = vmatpush1.bf16.msra.mxu0 %v1156_v37  ;;  %vm1380_vm1 = vmor %vm1367_vm14, %vm931_vm13  ;;  %vm948_vm14 = vcmask 1046534   ;;  %s223_s5 = scalar_lea.vmem %s1458_s4, %s1119_s29 }
  0x1b   : > { %669 = vmatprep.subr.bf16.mxu0 %v1167_v43  ;;  %v562_v5 = vsub.s32 0, %v1340_v4  ;;  %vm1415_vm12 = vmand %vm944_vm7, %vm945_vm8 }
  0x1e   : > { %670 = vmatpush1.bf16.msra.mxu0 %v1165_v42 }
  0x1f   : > { %749 = vmatprep.subr.bf16.mxu0 %v1173_v47 }
  0x21   : > { %1104 = vmatmul.mubr.msk.bf16.gmra.mxu0 %vm284_vm0, %v1155_v6  ;;  %v570_v6 = vsub.s32 2, %v1340_v4  ;;  %vm937_vm0 = vsmask.f32 3328 }
  0x22   : > { %687 = vmatprep.mubr.bf16.mxu0 %v1213_v45 }
  0xd9   : > { %v1101_v8 = vpop.f32.mrf.mxu0 }
  0xda   : > { %v364_v25 = vmax.f32 %v1101_v8, 0.0  ;;  %v566_v8 = vsub.s32 1, %v1340_v4 }
  0xdb   : > { %v331_v9 = vpop.f32.mrf.mxu0 }
  0xdc   : > { %v372_v30 = vmin.f32 %v364_v25, 6.0  ;;  %v362_v31 = vmax.f32 %v331_v9, 0.0  ;;  %v574_v9 = vsub.s32 3, %v1340_v4 }
  0xdd   : > { %v1102_v10 = vpop.f32.mrf.mxu0 }
  0xde   : > { %v365_v22 = vmax.f32 %v1102_v10, 0.0  ;;  %v370_v34 = vmin.f32 %v362_v31, 6.0 }
  0xdf   : > { %v334_v11 = vpop.f32.mrf.mxu0 }
  0xe0   : > { %v373_v27 = vmin.f32 %v365_v22, 6.0  ;;  %v363_v28 = vmax.f32 %v334_v11, 0.0 }
  0xe1   : > { %v1105_v12 = vpop.f32.mrf.mxu0 }
  0xe2   : > { %v368_v14 = vmax.f32 %v1105_v12, 0.0  ;;  %v379_v32 = vpack.c.bf16 %v373_v27, %v372_v30  ;;  %v371_v33 = vmin.f32 %v363_v28, 6.0 }
  0xe3   : > { %v347_v13 = vpop.f32.mrf.mxu0 }
  0xe4   : > { %v376_v18 = vmin.f32 %v368_v14, 6.0  ;;  %v366_v19 = vmax.f32 %v347_v13, 0.0  ;;  %v378_v35 = vpack.c.bf16 %v371_v33, %v370_v34  ;;  %v582_v33 = vsub.s32 5, %v1340_v4 }
  0xe5   : > { %v1106_v15 = vpop.f32.mrf.mxu0  ;;  %v590_v34 = vsub.s32 7, %v1340_v4 }
  0xe6   : > { %v369_v16 = vmax.f32 %v1106_v15, 0.0  ;;  %v374_v26 = vmin.f32 %v366_v19, 6.0  ;;  %v586_v19 = vsub.s32 6, %v1340_v4 }
  0xe7   : > { %v350_v17 = vpop.f32.mrf.mxu0 }
  0xe8   : > { %v377_v20 = vmin.f32 %v369_v16, 6.0  ;;  %v367_v21 = vmax.f32 %v350_v17, 0.0 }
  0xea   : > { %v375_v23 = vmin.f32 %v367_v21, 6.0  ;;  %v381_v24 = vpack.c.bf16 %v377_v20, %v376_v18  ;;  %v578_v18 = vsub.s32 4, %v1340_v4 }
  0xec   : > { %1108 = vmatpush3.bf16.msra.mxu1 %v381_v24  ;;  %v380_v29 = vpack.c.bf16 %v375_v23, %v374_v26  ;;  %v1214_v23 = vmov 1966171168  }
  0xed   : > { %1109 = vmatprep.subr.bf16.mxu1 %v1210_v7  ;;  %v864_v24 = vunpack.c.l.s4 %v1214_v23 }
  0xf0   : > { %1110 = vmatpush3.bf16.msra.mxu1 %v380_v29 }
  0xf1   : > { %1111 = vmatprep.subr.bf16.mxu1 %v1210_v7 }
  0xf4   : > { %1112 = vmatpush3.bf16.msra.mxu1 %v379_v32 }
  0xf5   : > { %1113 = vmatprep.subr.bf16.mxu1 %v1210_v7  ;;  %v456_v7 = vld [vmem:[%s1457_s3] sm:$0xff] }
  0xf6   : > { %v563_v10 = vrot.slane %v456_v7, %v562_v5  ;;  %v571_v11 = vrot.slane %v456_v7, %v570_v6  ;;  %v567_v13 = vrot.slane %v456_v7, %v566_v8  ;;  %v575_v15 = vrot.slane %v456_v7, %v574_v9 }
  0xf7   : > { %v579_v31 = vrot.slane %v456_v7, %v578_v18  ;;  %v587_v32 = vrot.slane %v456_v7, %v586_v19 }
  0xf8   : > { %1114 = vmatpush3.bf16.msra.mxu1 %v378_v35 }
  0xf9   : > { %626 = vmatprep.subr.bf16.mxu1 %v1161_v39 }
  0xfb   : > { %1116 = vmatmul.mubr.msk.bf16.vlgmr.msra.gmra.mxu1 %vm383_vm3, %v1212_v36  ;;  %vm940_vm3 = vcmask 1044484  }
  0xfc   : > { %627 = vmatpush1.bf16.msra.mxu1 %v1159_v40  ;;  %646 = vmatprep.mubr.bf16.mxu1 %v1213_v45  ;;  %v865_v40 = vunpack.c.0.s8 %v864_v24 }
  0xfd   : > { %628 = vmatprep.subr.bf16.mxu1 %v1164_v41 }
 0x100   : > { %629 = vmatpush1.bf16.msra.mxu1 %v1162_v44 }
 0x101   : > { %708 = vmatprep.subr.bf16.mxu1 %v1170_v46 }
 0x1bb   : > { %v421_v49 = vpop.f32.mrf.mxu1 }
 0x1bc   : > { %v427_v50 = vadd.f32 %v421_v49, %v382_v48  ;;  %v583_v48 = vrot.slane %v456_v7, %v582_v33  ;;  %v591_v49 = vrot.slane %v456_v7, %v590_v34 }
 0x1bd   : > { %v1117_v51 = vpop.f32.mrf.mxu1 }
 0x1be   : > { %429 = vst.msk [vmem:[#allocation2] sm:$0x1] %vm230_vm2, %v427_v50  ;;  %vm1386_vm2 = vmand %vm936_vm15, %vm937_vm0  ;;  %vm949_vm15 = vsmask.f32 6400 }
 0x1bf   : > { %v424_v52 = vpop.f32.mrf.mxu1  ;;  %vm939_vm5 = vmor %vm1386_vm2, %vm1380_vm1  ;;  %vm952_vm2 = vcmask 1047559  }
 0x1c0   : > { %vm950_vm1 = vmand %vm948_vm14, %vm949_vm15 }
 0x1c1   : > { %v1118_v53 = vpop.f32.mrf.mxu1 }
 0x1c5   : > { %v433_v54 = vld [vmem:[#allocation2] sm:$0x1] }
 0x1c6   : > { %v434_v55 = vmul.f32 0.015625, %v433_v54  ;;  %v1395_v54 = vsub.s32 %v865_v40, %v1340_v4 }
 0x1c8   : > { %v435_v58 = vpack.c.bf16 %v434_v55, %v434_v55 }
 0x1ca   : > { %1068 = vmatmul.mubr.msk.bf16.vlgmr.msra.gmra.mxu1 %vm610_vm4, %v435_v58  ;;  %1069 = vmatmul.mubr.msk.bf16.vlgmr.msra.gmra.mxu0 %vm610_vm4, %v435_v58 }
 0x1cb   : > { %709 = vmatpush1.bf16.msra.mxu1 %v1168_v56  ;;  %750 = vmatpush1.bf16.msra.mxu0 %v1171_v57  ;;  %v457_v57 = vld [vmem:[%s1457_s3 + $0x8] sm:$0x3] }
 0x1cc   : > { %710 = vmatprep.subr.bf16.mxu1 %v1176_v59  ;;  %751 = vmatprep.subr.bf16.mxu0 %v1179_v60 }
 0x1cd   : > { %728 = vmatprep.mubr.bf16.mxu1 %v1213_v45  ;;  %769 = vmatprep.mubr.bf16.mxu0 %v1213_v45 }
 0x1cf   : > { %711 = vmatpush1.bf16.msra.mxu1 %v1174_v61  ;;  %752 = vmatpush1.bf16.msra.mxu0 %v1177_v62 }
 0x1d0   : > { %790 = vmatprep.subr.bf16.mxu1 %v1182_v63 }
 0x1d2   : > { %1070 = vmatmul.mubr.msk.bf16.vlgmr.msra.gmra.mxu1 %vm610_vm4, %v435_v58  ;;  %1071 = vmatmul.mubr.msk.bf16.vlgmr.msra.gmra.mxu0 %vm610_vm4, %v435_v58 }
 0x1d3   : > { %791 = vmatpush1.bf16.msra.mxu1 %v1180_v0  ;;  %810 = vmatprep.mubr.bf16.mxu1 %v1213_v45 }
 0x1d4   : > { %792 = vmatprep.subr.bf16.mxu1 %v1185_v1 }
 0x1d7   : > { %793 = vmatpush1.bf16.msra.mxu1 %v1183_v2  ;;  %v595_v2 = vrot.slane %v457_v57, %v562_v5 }
 0x1da   : > { %1072 = vmatmul.mubr.msk.bf16.vlgmr.msra.gmra.mxu1 %vm610_vm4, %v435_v58  ;;  %vm941_vm4 = vsmask.f32 4352 }
 0x1db   : > { %vm942_vm6 = vmand %vm940_vm3, %vm941_vm4  ;;  %vm953_vm3 = vsmask.f32 7424 }
 0x1dc   : > { %vm1408_vm11 = vmor %vm942_vm6, %vm939_vm5 }
 0x1dd   : > { %vm947_vm0 = vmor %vm1415_vm12, %vm1408_vm11 }
 0x1de   : > { %vm951_vm4 = vmor %vm950_vm1, %vm947_vm0 }
 0x1df   : > { %vm954_vm5 = vmand %vm952_vm2, %vm953_vm3 }
 0x1e0   : > { %vm955_vm6 = vmor %vm954_vm5, %vm951_vm4 }
 0x28a   : > { %v648_v16 = vpop.f32.mrf.mxu1  ;;  %v689_v17 = vpop.f32.mrf.mxu0 }
 0x28b   : > { %v649_v20 = vadd.f32 %v648_v16, %v563_v10  ;;  %v690_v21 = vadd.f32 %v689_v17, %v571_v11  ;;  %v599_v11 = vrot.slane %v457_v57, %v566_v8 }
 0x28c   : > { %v650_v22 = vpop.f32.mrf.mxu1  ;;  %v691_v25 = vpop.f32.mrf.mxu0 }
 0x28d   : > { %v651_v27 = vadd.f32 %v650_v22, %v567_v13  ;;  %v692_v28 = vadd.f32 %v691_v25, %v575_v15  ;;  %v819_v35 = vmax.f32 %v649_v20, 0.0  ;;  %v821_v36 = vmax.f32 %v690_v21, 0.0 }
 0x28e   : > { %v652_v29 = vpop.f32.mrf.mxu1  ;;  %v693_v30 = vpop.f32.mrf.mxu0 }
 0x28f   : > { %v820_v37 = vmax.f32 %v651_v27, 0.0  ;;  %v822_v38 = vmax.f32 %v692_v28, 0.0  ;;  %v829_v50 = vmin.f32 %v819_v35, 6.0  ;;  %v831_v51 = vmin.f32 %v821_v36, 6.0 }
 0x290   : > { %v653_v41 = vpop.f32.mrf.mxu1  ;;  %v694_v42 = vpop.f32.mrf.mxu0 }
 0x291   : > { %v830_v44 = vmin.f32 %v820_v37, 6.0  ;;  %v832_v45 = vmin.f32 %v822_v38, 6.0  ;;  %v956_v37 = vld [vmem:[%s223_s5] sm:$0xff]  ;;  %v959_v41 = vld [vmem:[%s223_s5 + $0x8] sm:$0x3] }
 0x292   : > { %v730_v46 = vpop.f32.mrf.mxu1  ;;  %v771_v47 = vpop.f32.mrf.mxu0 }
 0x293   : > { %v731_v52 = vadd.f32 %v730_v46, %v579_v31  ;;  %v772_v53 = vadd.f32 %v771_v47, %v587_v32  ;;  %v1073_v58 = vpack.c.bf16 %v830_v44, %v829_v50  ;;  %v1074_v59 = vpack.c.bf16 %v832_v45, %v831_v51 }
 0x294   : > { %v732_v55 = vpop.f32.mrf.mxu1  ;;  %v773_v56 = vpop.f32.mrf.mxu0 }
 0x295   : > { %v823_v60 = vmax.f32 %v731_v52, 0.0  ;;  %v825_v61 = vmax.f32 %v772_v53, 0.0  ;;  %v733_v62 = vadd.f32 %v732_v55, %v583_v48  ;;  %v774_v63 = vadd.f32 %v773_v56, %v591_v49 }
 0x296   : > { %v734_v0 = vpop.f32.mrf.mxu1  ;;  %v775_v1 = vpop.f32.mrf.mxu0  ;;  %v869_v13 = vrot.slane %v1073_v58, %v1395_v54  ;;  %v876_v15 = vrot.slane %v1074_v59, %v1395_v54 }
 0x297   : > { %v824_v6 = vmax.f32 %v733_v62, 0.0  ;;  %v826_v7 = vmax.f32 %v774_v63, 0.0  ;;  %v833_v16 = vmin.f32 %v823_v60, 6.0  ;;  %v835_v17 = vmin.f32 %v825_v61, 6.0 }
 0x298   : > { %v735_v9 = vpop.f32.mrf.mxu1  ;;  %v776_v10 = vpop.f32.mrf.mxu0  ;;  %v891_v25 = vcombine.low %v869_v13, %v876_v15 }
 0x299   : > { %v834_v18 = vmin.f32 %v824_v6, 6.0  ;;  %v836_v19 = vmin.f32 %v826_v7, 6.0 }
 0x29a   : > { %v812_v20 = vpop.f32.mrf.mxu1  ;;  %v899_v34 = vrot.slane %v891_v25, %v1395_v54 }
 0x29b   : > { %v813_v21 = vadd.f32 %v812_v20, %v595_v2  ;;  %v1075_v4 = vpack.c.bf16 %v834_v18, %v833_v16  ;;  %v1076_v8 = vpack.c.bf16 %v836_v19, %v835_v17 }
 0x29c   : > { %v814_v22 = vpop.f32.mrf.mxu1 }
 0x29d   : > { %v827_v23 = vmax.f32 %v813_v21, 0.0  ;;  %v815_v24 = vadd.f32 %v814_v22, %v599_v11  ;;  %v883_v26 = vrot.slane %v1075_v4, %v1395_v54  ;;  %v890_v27 = vrot.slane %v1076_v8, %v1395_v54 }
 0x29e   : > { %v816_v28 = vpop.f32.mrf.mxu1 }
 0x29f   : > { %v828_v29 = vmax.f32 %v815_v24, 0.0  ;;  %v892_v30 = vcombine.low %v883_v26, %v890_v27  ;;  %v837_v32 = vmin.f32 %v827_v23, 6.0 }
 0x2a0   : > { %v817_v31 = vpop.f32.mrf.mxu1 }
 0x2a1   : > { %v838_v33 = vmin.f32 %v828_v29, 6.0  ;;  %v906_v35 = vrot.slane %v892_v30, %v1395_v54 }
 0x2a3   : > { %v1077_v36 = vpack.c.bf16 %v838_v33, %v837_v32  ;;  %v907_v38 = vcombine.low %v899_v34, %v906_v35 }
 0x2a5   : > { %v915_v39 = vrot.slane %v1077_v36, %v1395_v54  ;;  %v957_v40 = vsel %vm955_vm6, %v907_v38, %v956_v37 }
 0x2a6   : > { %958 = vst [vmem:[%s223_s5] sm:$0xff] %v957_v40 }
 0x2a7   : > { %v922_v42 = vrot.slane %v915_v39, %v1395_v54 }
 0x2a9   : > { %v960_v43 = vsel %vm931_vm13, %v922_v42, %v959_v41 }
 0x2aa   : > { %961 = vst [vmem:[%s223_s5 + $0x8] sm:$0x3] %v960_v43 }
 0x2ab PF: > { %s14_s17 = sadd.s32 1, %s1208_s17   ;;  %s1473_s15 = smov %s1204_s16 }
 0x2ac   : > { %p11_p5 = scmp.ge.s32.totalorder %s14_s17, 4   ;;  %s1474_s16 = smov %s1476_s18 }
 0x2ae   :  { %13 = sbr.rel (!%p11_p5) target bundleno = 2 (0x2), region = 74 }

// kernel: blood_sweat_tears_forward.3
= control target key start
LH: loop header
LB: loop body
LE: loop exit
PB: predicated region body
PF: predicated region fallthrough
CT: control target
= control target key end

     0   :  { %vm78_vm0 = vcmask 1042432   ;;  %vm74_vm1 = vcmask 89088   ;;  %v2284_v9 = vmov 0.0   ;;  %s2848_s0 = inlined_call_operand.vmem [shape: bf16[2,1280], index: 0, kind: input, shape index: {}]   ;;  %s2849_s1 = inlined_call_operand.vmem [shape: f32[2,11], index: 1, kind: input, shape index: {}]   ;;  %s2850_s2 = inlined_call_operand.vmem [shape: f32[11,512], index: 2, kind: input, shape index: {}]   ;;  %s2851_s3 = inlined_call_operand.vmem [shape: f32[1,512], index: 3, kind: input, shape index: {}]   ;;  %s2852_s4 = inlined_call_operand.vmem [shape: f32[1,512], index: 4, kind: input, shape index: {}]   ;;  %s2853_s5 = inlined_call_operand.vmem [shape: f32[1,512], index: 5, kind: input, shape index: {}]   ;;  %s2854_s6 = inlined_call_operand.vmem [shape: bf16[512,128], index: 6, kind: input, shape index: {}]   ;;  %s2855_s7 = inlined_call_operand.vmem [shape: f32[1,128], index: 7, kind: input, shape index: {}]   ;;  %s2856_s8 = inlined_call_operand.vmem [shape: f32[1,128], index: 8, kind: input, shape index: {}]   ;;  %s2857_s9 = inlined_call_operand.vmem [shape: f32[1,128], index: 9, kind: input, shape index: {}]   ;;  %s2858_s10 = inlined_call_operand.vmem [shape: bf16[1408,128], index: 10, kind: input, shape index: {}]   ;;  %s2859_s11 = inlined_call_operand.vmem [shape: f32[1,128], index: 11, kind: input, shape index: {}]   ;;  %s2860_s12 = inlined_call_operand.hbm [shape: f32[2,128], index: 12, kind: output, shape index: {}]  }
   0x1   :  { %v49_v0 = vld [vmem:[%s2850_s2 + $0x28] sm:$0x7]  ;;  %v51_v1 = vld [vmem:[%s2850_s2 + $0x38] sm:$0x7]  ;;  %v48_v3 = vld [vmem:[%s2850_s2 + $0x20] sm:$0x7]  ;;  %155 = vmatprep.mubr.f32.mxu0 %v2284_v9  ;;  %226 = vmatprep.mubr.f32.mxu1 %v2284_v9 }
   0x2   :  { %v45_v2 = vld [vmem:[%s2850_s2 + $0x8] sm:$0xff]  ;;  %1813 = vmatprep.subr.msk.mxu0 %vm78_vm0, %v49_v0  ;;  %1816 = vmatprep.subr.msk.mxu1 %vm78_vm0, %v51_v1  ;;  %v50_v4 = vld [vmem:[%s2850_s2 + $0x30] sm:$0x7]  ;;  %v47_v5 = vld [vmem:[%s2850_s2 + $0x18] sm:$0xff] }
   0x3   :  { %1814 = vmatpush1.msk.msra.mxu0 %vm78_vm0, %v48_v3  ;;  %1817 = vmatpush1.msk.msra.mxu1 %vm78_vm0, %v50_v4  ;;  %v44_v6 = vld [vmem:[%s2850_s2] sm:$0xff]  ;;  %v46_v7 = vld [vmem:[%s2850_s2 + $0x10] sm:$0xff] }
   0x4   :  { %v43_v8 = vld [vmem:[%s2849_s1] sm:$0x3]  ;;  %121 = vmatprep.subr.mxu0 %v45_v2  ;;  %192 = vmatprep.subr.mxu1 %v47_v5 }
   0x5   :  { %122 = vmatpush1.msra.mxu0 %v44_v6  ;;  %193 = vmatpush1.msra.mxu1 %v46_v7 }
   0x6   :  { %1815 = vmatmul.mubr.msk.f32.vlgmr.msra.gmra.mxu0 %vm74_vm1, %v43_v8  ;;  %1818 = vmatmul.mubr.msk.f32.vlgmr.msra.gmra.mxu1 %vm74_vm1, %v43_v8 }
   0x7   :  { %17 = vsyncpa [#allocation3], 0  ;;  %v2131_v10 = vld [vmem:[%s2854_s6 + $0x78] sm:$0xff]   ;;  %v2135_v14 = vld [vmem:[%s2854_s6 + $0x70] sm:$0xff]   ;;  %v54_v42 = vlaneseq  ;;  %vm233_vm2 = vcmask 1041408   ;;  %vm2286_vm3 = vmmov 0  }
   0x8   :  { %v2132_v11 = vld [vmem:[%s2854_s6 + $0xf8] sm:$0xff]   ;;  %1944 = vmatprep.subr.bf16.mxu0 %v2131_v10  ;;  %v2136_v15 = vld [vmem:[%s2854_s6 + $0xf0] sm:$0xff]   ;;  %v2139_v18 = vld [vmem:[%s2854_s6 + $0x68] sm:$0xff]   ;;  %s2287_s14 = smov [#allocation2]  }
   0x9   :  { %v2133_v12 = vld [vmem:[%s2854_s6 + $0x38] sm:$0xff]   ;;  %1966 = vmatprep.subr.bf16.mxu1 %v2132_v11  ;;  %v2137_v16 = vld [vmem:[%s2854_s6 + $0x30] sm:$0xff]   ;;  %v2140_v19 = vld [vmem:[%s2854_s6 + $0xe8] sm:$0xff]   ;;  %v2479_v43 = vshrl.u32 %v54_v42, 7  ;;  %s1805_s15 = sshll.u32 %s2287_s14, 4  ;;  %s1806_s15 = int_to_ptr.vmem [resolvable:$true] %s1805_s15 }
   0xa   :  { %v2134_v13 = vld [vmem:[%s2854_s6 + $0xb8] sm:$0xff]   ;;  %1945 = vmatpush3.bf16.msra.mxu0 %v2133_v12  ;;  %v2138_v17 = vld [vmem:[%s2854_s6 + $0xb0] sm:$0xff]   ;;  %v2141_v20 = vld [vmem:[%s2854_s6 + $0x28] sm:$0xff]   ;;  %s2262_s16 = scalar_lea.vmem %s1806_s15, 32  ;;  %p2267_p1 = scmp.lt.s32.totalorder %s1806_s15, %s1806_s15 }
   0xb   :  { %1967 = vmatpush3.bf16.msra.mxu1 %v2134_v13  ;;  %1946 = vmatprep.subr.bf16.mxu0 %v2135_v14  ;;  %v2142_v21 = vld [vmem:[%s2854_s6 + $0xa8] sm:$0xff]   ;;  %v2143_v22 = vld [vmem:[%s2854_s6 + $0x60] sm:$0xff]   ;;  %v2147_v26 = vld [vmem:[%s2854_s6 + $0x58] sm:$0xff]   ;;  %v2482_v44 = vsub.s32 0, %v2479_v43  ;;  %v2485_v45 = vsub.s32 2, %v2479_v43  ;;  %v2491_v47 = vsub.s32 1, %v2479_v43  ;;  %p2263_p0 = scmp.ne.s32.totalorder %s1806_s15, %s2262_s16  ;;  %p2268_p2 = scmp.lt.s32.totalorder %s2262_s16, %s2262_s16 }
   0xc   :  { %1968 = vmatprep.subr.bf16.mxu1 %v2136_v15  ;;  %v2144_v23 = vld [vmem:[%s2854_s6 + $0xe0] sm:$0xff]   ;;  %v2148_v27 = vld [vmem:[%s2854_s6 + $0xd8] sm:$0xff]   ;;  %v2151_v30 = vld [vmem:[%s2854_s6 + $0x50] sm:$0xff]   ;;  %v2494_v48 = vsub.s32 3, %v2479_v43 }
   0xd   :  { %v2145_v24 = vld [vmem:[%s2854_s6 + $0x20] sm:$0xff]   ;;  %v2149_v28 = vld [vmem:[%s2854_s6 + $0x18] sm:$0xff]   ;;  %v2152_v31 = vld [vmem:[%s2854_s6 + $0xd0] sm:$0xff]   ;;  %p2269_p3 = por %p2268_p2, %p2267_p1 }
   0xe   :  { %1947 = vmatpush3.bf16.msra.mxu0 %v2137_v16  ;;  %v2146_v25 = vld [vmem:[%s2854_s6 + $0xa0] sm:$0xff]   ;;  %v2150_v29 = vld [vmem:[%s2854_s6 + $0x98] sm:$0xff]   ;;  %v2153_v32 = vld [vmem:[%s2854_s6 + $0x10] sm:$0xff]  }
   0xf   :  { %1969 = vmatpush3.bf16.msra.mxu1 %v2138_v17  ;;  %1948 = vmatprep.subr.bf16.mxu0 %v2139_v18  ;;  %v2154_v33 = vld [vmem:[%s2854_s6 + $0x90] sm:$0xff]   ;;  %v2155_v34 = vld [vmem:[%s2854_s6 + $0x48] sm:$0xff]   ;;  %v2159_v38 = vld [vmem:[%s2854_s6 + $0x40] sm:$0xff]   ;;  %p2270_p4 = pnand %p2269_p3, %p2263_p0 }
  0x10   :  { %1970 = vmatprep.subr.bf16.mxu1 %v2140_v19  ;;  %v2156_v35 = vld [vmem:[%s2854_s6 + $0xc8] sm:$0xff]   ;;  %v2160_v39 = vld [vmem:[%s2854_s6 + $0xc0] sm:$0xff]  }
  0x11   :  { %v2157_v36 = vld [vmem:[%s2854_s6 + $0x8] sm:$0xff]   ;;  %v2161_v40 = vld [vmem:[%s2854_s6] sm:$0xff]  }
  0x12   :  { %1949 = vmatpush3.bf16.msra.mxu0 %v2141_v20  ;;  %v2158_v37 = vld [vmem:[%s2854_s6 + $0x88] sm:$0xff]   ;;  %v2162_v41 = vld [vmem:[%s2854_s6 + $0x80] sm:$0xff]  }
  0x13   :  { %1971 = vmatpush3.bf16.msra.mxu1 %v2142_v21  ;;  %1950 = vmatprep.subr.bf16.mxu0 %v2143_v22  ;;  %v52_v46 = vld [vmem:[%s2851_s3] sm:$0xf] }
  0x14   :  { %1972 = vmatprep.subr.bf16.mxu1 %v2144_v23  ;;  %v57_v49 = vrot.slane %v52_v46, %v2482_v44  ;;  %v65_v50 = vrot.slane %v52_v46, %v2485_v45  ;;  %v61_v51 = vrot.slane %v52_v46, %v2491_v47  ;;  %v69_v52 = vrot.slane %v52_v46, %v2494_v48 }
  0x16   :  { %1951 = vmatpush3.bf16.msra.mxu0 %v2145_v24 }
  0x17   :  { %1973 = vmatpush3.bf16.msra.mxu1 %v2146_v25  ;;  %1952 = vmatprep.subr.bf16.mxu0 %v2147_v26 }
  0x18   :  { %1974 = vmatprep.subr.bf16.mxu1 %v2148_v27 }
  0x1a   :  { %1953 = vmatpush3.bf16.msra.mxu0 %v2149_v28 }
  0x1b   :  { %1975 = vmatpush3.bf16.msra.mxu1 %v2150_v29  ;;  %1954 = vmatprep.subr.bf16.mxu0 %v2151_v30 }
  0x1c   :  { %1976 = vmatprep.subr.bf16.mxu1 %v2152_v31 }
  0x1e   :  { %1955 = vmatpush3.bf16.msra.mxu0 %v2153_v32 }
  0x1f   :  { %1977 = vmatpush3.bf16.msra.mxu1 %v2154_v33  ;;  %1956 = vmatprep.subr.bf16.mxu0 %v2155_v34 }
  0x20   :  { %1978 = vmatprep.subr.bf16.mxu1 %v2156_v35 }
  0x22   :  { %1957 = vmatpush3.bf16.msra.mxu0 %v2157_v36 }
  0x23   :  { %1979 = vmatpush3.bf16.msra.mxu1 %v2158_v37  ;;  %1958 = vmatprep.subr.bf16.mxu0 %v2159_v38 }
  0x24   :  { %1980 = vmatprep.subr.bf16.mxu1 %v2160_v39 }
  0x26   :  { %1959 = vmatpush3.bf16.msra.mxu0 %v2161_v40 }
  0x27   :  { %1981 = vmatpush3.bf16.msra.mxu1 %v2162_v41  ;;  %2107 = vmatprep.subr.bf16.mxu0 %v2284_v9 }
  0xc6   :  { %v157_v53 = vpop.f32.mrf.mxu0  ;;  %v228_v54 = vpop.f32.mrf.mxu1 }
  0xc7   :  { %v158_v55 = vadd.f32 %v157_v53, %v57_v49  ;;  %v229_v56 = vadd.f32 %v228_v54, %v65_v50 }
  0xc8   :  { %v159_v57 = vpop.f32.mrf.mxu0  ;;  %v230_v58 = vpop.f32.mrf.mxu1 }
  0xc9   :  { %v234_v59 = vsel %vm233_vm2, %v158_v55, 0.0  ;;  %v248_v60 = vsel %vm233_vm2, %v229_v56, 0.0  ;;  %v160_v61 = vadd.f32 %v159_v57, %v61_v51  ;;  %v231_v62 = vadd.f32 %v230_v58, %v69_v52 }
  0xca   :  { %v235_v63 = vrot.slane %v234_v59, 4  ;;  %v249_v0 = vrot.slane %v248_v60, 4 }
  0xcb   :  { %v241_v1 = vsel %vm233_vm2, %v160_v61, 0.0  ;;  %v255_v2 = vsel %vm233_vm2, %v231_v62, 0.0 }
  0xcc   :  { %v236_v3 = vadd.f32 %v235_v63, %v234_v59  ;;  %v250_v4 = vadd.f32 %v249_v0, %v248_v60  ;;  %v242_v5 = vrot.slane %v241_v1, 4  ;;  %v256_v6 = vrot.slane %v255_v2, 4 }
  0xce   :  { %v237_v7 = vrot.slane %v236_v3, 2  ;;  %v251_v8 = vrot.slane %v250_v4, 2  ;;  %v243_v10 = vadd.f32 %v242_v5, %v241_v1  ;;  %v257_v11 = vadd.f32 %v256_v6, %v255_v2 }
  0xd0   :  { %v238_v12 = vadd.f32 %v237_v7, %v236_v3  ;;  %v252_v13 = vadd.f32 %v251_v8, %v250_v4  ;;  %v244_v14 = vrot.slane %v243_v10, 2  ;;  %v258_v15 = vrot.slane %v257_v11, 2 }
  0xd2   :  { %v239_v16 = vrot.slane %v238_v12, 1  ;;  %v253_v17 = vrot.slane %v252_v13, 1  ;;  %v245_v18 = vadd.f32 %v244_v14, %v243_v10  ;;  %v259_v19 = vadd.f32 %v258_v15, %v257_v11 }
  0xd4   :  { %v240_v20 = vadd.f32 %v239_v16, %v238_v12  ;;  %v254_v21 = vadd.f32 %v253_v17, %v252_v13  ;;  %v246_v22 = vrot.slane %v245_v18, 1  ;;  %v260_v23 = vrot.slane %v259_v19, 1  ;;  %v319_v16 = vld [vmem:[%s2852_s4] sm:$0xf] }
  0xd5   :  { %v345_v17 = vld [vmem:[%s2853_s5] sm:$0xf] }
  0xd6   :  { %v263_v24 = vmul.f32 0.5, %v240_v20  ;;  %v265_v25 = vmul.f32 0.5, %v254_v21  ;;  %v247_v26 = vadd.f32 %v246_v22, %v245_v18  ;;  %v261_v27 = vadd.f32 %v260_v23, %v259_v19 }
  0xd7   :  { %v324_v18 = vrot.slane %v319_v16, %v2482_v44  ;;  %v332_v20 = vrot.slane %v319_v16, %v2485_v45  ;;  %v328_v23 = vrot.slane %v319_v16, %v2491_v47 }
  0xd8   :  { %v267_v28 = vsub.f32 %v158_v55, %v263_v24  ;;  %v269_v29 = vsub.f32 %v229_v56, %v265_v25  ;;  %v264_v30 = vmul.f32 0.5, %v247_v26  ;;  %v266_v31 = vmul.f32 0.5, %v261_v27 }
  0xd9   :  { %v350_v24 = vrot.slane %v345_v17, %v2482_v44  ;;  %v336_v27 = vrot.slane %v319_v16, %v2494_v48 }
  0xda   :  { %v271_v32 = vmul.f32 %v267_v28, %v267_v28  ;;  %v273_v33 = vmul.f32 %v269_v29, %v269_v29  ;;  %v268_v34 = vsub.f32 %v160_v61, %v264_v30  ;;  %v270_v35 = vsub.f32 %v231_v62, %v266_v31 }
  0xdb   :  { %v358_v30 = vrot.slane %v345_v17, %v2485_v45 }
  0xdc   :  { %v275_v36 = vsel %vm233_vm2, %v271_v32, 0.0  ;;  %v289_v37 = vsel %vm233_vm2, %v273_v33, 0.0  ;;  %v272_v38 = vmul.f32 %v268_v34, %v268_v34  ;;  %v274_v39 = vmul.f32 %v270_v35, %v270_v35 }
  0xdd   :  { %v276_v40 = vrot.slane %v275_v36, 4  ;;  %v290_v41 = vrot.slane %v289_v37, 4 }
  0xde   :  { %v282_v42 = vsel %vm233_vm2, %v272_v38, 0.0  ;;  %v296_v46 = vsel %vm233_vm2, %v274_v39, 0.0  ;;  %v362_v39 = vrot.slane %v345_v17, %v2494_v48  ;;  %v2164_v48 = vld [vmem:[%s2858_s10 + $0x38] sm:$0xff]  }
  0xdf   :  { %v277_v49 = vadd.f32 %v276_v40, %v275_v36  ;;  %v291_v50 = vadd.f32 %v290_v41, %v289_v37  ;;  %v283_v51 = vrot.slane %v282_v42, 4  ;;  %v297_v52 = vrot.slane %v296_v46, 4 }
  0xe0   :  { %v354_v36 = vrot.slane %v345_v17, %v2491_v47  ;;  %v2163_v47 = vld [vmem:[%s2858_s10 + $0x78] sm:$0xff]  }
  0xe1   :  { %v278_v53 = vrot.slane %v277_v49, 2  ;;  %v292_v54 = vrot.slane %v291_v50, 2  ;;  %v284_v55 = vadd.f32 %v283_v51, %v282_v42  ;;  %v298_v56 = vadd.f32 %v297_v52, %v296_v46  ;;  %1997 = vmatprep.subr.bf16.mxu1 %v2163_v47  ;;  %v2186_v17 = vld [vmem:[%s2858_s10 + $0x178] sm:$0xff]  }
  0xe2   :  { %v2237_v47 = vld [vmem:[%s2858_s10 + $0x218] sm:$0xff]  }
  0xe3   :  { %v279_v57 = vadd.f32 %v278_v53, %v277_v49  ;;  %v293_v58 = vadd.f32 %v292_v54, %v291_v50  ;;  %v285_v59 = vrot.slane %v284_v55, 2  ;;  %v299_v60 = vrot.slane %v298_v56, 2  ;;  %v2166_v54 = vld [vmem:[%s2858_s10 + $0x2b8] sm:$0xff]  }
  0xe5   :  { %v280_v61 = vrot.slane %v279_v57, 1  ;;  %v294_v62 = vrot.slane %v293_v58, 1  ;;  %v286_v63 = vadd.f32 %v285_v59, %v284_v55  ;;  %v300_v0 = vadd.f32 %v299_v60, %v298_v56  ;;  %v2167_v55 = vld [vmem:[%s2858_s10 + $0x30] sm:$0xff]   ;;  %v2168_v56 = vld [vmem:[%s2858_s10 + $0x68] sm:$0xff]   ;;  %v2171_v59 = vld [vmem:[%s2858_s10 + $0x60] sm:$0xff]  }
  0xe6   :  { %v2172_v60 = vld [vmem:[%s2858_s10 + $0x2a8] sm:$0xff]  }
  0xe7   :  { %v281_v1 = vadd.f32 %v280_v61, %v279_v57  ;;  %v295_v2 = vadd.f32 %v294_v62, %v293_v58  ;;  %v287_v3 = vrot.slane %v286_v63, 1  ;;  %v301_v4 = vrot.slane %v300_v0, 1  ;;  %v2169_v57 = vld [vmem:[%s2858_s10 + $0x2b0] sm:$0xff]   ;;  %v2170_v58 = vld [vmem:[%s2858_s10 + $0x28] sm:$0xff]   ;;  %v2173_v61 = vld [vmem:[%s2858_s10 + $0x20] sm:$0xff]  }
  0xe8   :  { %v2285_v62 = vmov 1966171168  }
  0xe9   :  { %v303_v5 = vmul.f32 0.5, %v281_v1  ;;  %v305_v6 = vmul.f32 0.5, %v295_v2  ;;  %v288_v7 = vadd.f32 %v287_v3, %v286_v63  ;;  %v302_v8 = vadd.f32 %v301_v4, %v300_v0  ;;  %v2174_v0 = vld [vmem:[%s2858_s10 + $0x58] sm:$0xff]   ;;  %v2175_v1 = vld [vmem:[%s2858_s10 + $0x2a0] sm:$0xff]   ;;  %v2177_v4 = vld [vmem:[%s2858_s10 + $0x50] sm:$0xff]  }
  0xea   :  { %v1031_v63 = vunpack.c.l.s4 %v2285_v62  ;;  %v2176_v2 = vld [vmem:[%s2858_s10 + $0x18] sm:$0xff]  }
  0xeb   :  { %v307_v10 = vadd.f32 1e-05, %v303_v5  ;;  %v309_v11 = vadd.f32 1e-05, %v305_v6  ;;  %v304_v12 = vmul.f32 0.5, %v288_v7  ;;  %v306_v13 = vmul.f32 0.5, %v302_v8 }
  0xec   :  { %v1032_v3 = vunpack.c.0.s8 %v1031_v63  ;;  %v2178_v5 = vld [vmem:[%s2858_s10 + $0x298] sm:$0xff]   ;;  %v2179_v6 = vld [vmem:[%s2858_s10 + $0x10] sm:$0xff]   ;;  %v2180_v8 = vld [vmem:[%s2858_s10 + $0x48] sm:$0xff]  }
  0xed   :  { %2252 = vrsqrt.f32 %v307_v10  ;;  %v308_v14 = vadd.f32 1e-05, %v304_v12  ;;  %v310_v15 = vadd.f32 1e-05, %v306_v13  ;;  %v2181_v10 = vld [vmem:[%s2858_s10 + $0x290] sm:$0xff]   ;;  %v2183_v12 = vld [vmem:[%s2858_s10 + $0x40] sm:$0xff]  }
  0xee   :  { %2254 = vrsqrt.f32 %v309_v11  ;;  %v2578_v7 = vsub.s32 %v1032_v3, %v2479_v43  ;;  %v2182_v11 = vld [vmem:[%s2858_s10 + $0x8] sm:$0xff]   ;;  %v760_v43 = vld [vmem:[%s2848_s0] sm:$0xff] }
  0xef   :  { %2256 = vrsqrt.f32 %v308_v14  ;;  %v2184_v14 = vld [vmem:[%s2858_s10 + $0x288] sm:$0xff]  }
  0xf0   :  { %2258 = vrsqrt.f32 %v310_v15  ;;  %v1036_v13 = vrot.slane %v760_v43, %v2578_v7  ;;  %v2185_v15 = vld [vmem:[%s2858_s10] sm:$0xff]  }
  0xf2   :  { %v1044_v16 = vcombine.high %v1036_v13, %v1036_v13 }
  0xfa   :  { %v2253_v19 = vpop.eup %2252 }
  0xfb   :  { %v2255_v21 = vpop.eup %2254  ;;  %v315_v22 = vmul.f32 %v2253_v19, %v267_v28  ;;  %v2611_v19 = vrot.slane %v1036_v13, %v2578_v7 }
  0xfc   :  { %v2257_v25 = vpop.eup %2256  ;;  %v317_v26 = vmul.f32 %v2255_v21, %v269_v29  ;;  %v2188_v21 = vld [vmem:[%s2858_s10 + $0x138] sm:$0xff]  }
  0xfd   :  { %v2259_v31 = vpop.eup %2258  ;;  %v341_v32 = vmul.f32 %v324_v18, %v315_v22  ;;  %v316_v33 = vmul.f32 %v2257_v25, %v268_v34  ;;  %v2187_v18 = vld [vmem:[%s2858_s10 + $0x280] sm:$0xff]   ;;  %v2189_v22 = vld [vmem:[%s2858_s10 + $0xf8] sm:$0xff]   ;;  %v2196_v25 = vld [vmem:[%s2858_s10 + $0x128] sm:$0xff]  }
  0xfe   :  { %v343_v37 = vmul.f32 %v332_v20, %v317_v26  ;;  %v318_v38 = vmul.f32 %v2259_v31, %v270_v35  ;;  %v2165_v35 = vld [vmem:[%s2858_s10 + $0x70] sm:$0xff]   ;;  %v2615_v20 = vrot.slane %v1044_v16, %v2578_v7  ;;  %v2198_v26 = vld [vmem:[%s2858_s10 + $0x160] sm:$0xff]   ;;  %v2204_v31 = vld [vmem:[%s2858_s10 + $0x118] sm:$0xff]  }
  0xff   :  { %v342_v28 = vmul.f32 %v328_v23, %v316_v33  ;;  %v367_v40 = vadd.f32 %v350_v24, %v341_v32  ;;  %v2190_v23 = vld [vmem:[%s2858_s10 + $0x170] sm:$0xff]  }
 0x100   :  { %v344_v41 = vmul.f32 %v336_v27, %v318_v38  ;;  %v369_v42 = vadd.f32 %v358_v30, %v343_v37  ;;  %v2192_v24 = vld [vmem:[%s2858_s10 + $0x130] sm:$0xff]   ;;  %v2200_v27 = vld [vmem:[%s2858_s10 + $0x120] sm:$0xff]   ;;  %v2202_v30 = vld [vmem:[%s2858_s10 + $0x158] sm:$0xff]   ;;  %v1029_v38 = vcombine.high %v760_v43, %v760_v43 }
 0x101   :  { %v368_v44 = vadd.f32 %v354_v36, %v342_v28  ;;  %v371_v29 = vmax.f32 %v367_v40, 0.0  ;;  %v2206_v32 = vld [vmem:[%s2858_s10 + $0x150] sm:$0xff]   ;;  %v2210_v36 = vld [vmem:[%s2858_s10 + $0x148] sm:$0xff]   ;;  %v2216_v40 = vld [vmem:[%s2858_s10 + $0x100] sm:$0xff]  }
 0x102   :  { %v370_v46 = vadd.f32 %v362_v39, %v344_v41  ;;  %v373_v50 = vmax.f32 %v369_v42, 0.0  ;;  %v2208_v33 = vld [vmem:[%s2858_s10 + $0x110] sm:$0xff]   ;;  %v2212_v37 = vld [vmem:[%s2858_s10 + $0x108] sm:$0xff]   ;;  %v2214_v39 = vld [vmem:[%s2858_s10 + $0x140] sm:$0xff]   ;;  %v1043_v28 = vrot.slane %v1029_v38, %v2578_v7 }
 0x103   :  { %v372_v49 = vmax.f32 %v368_v44, 0.0  ;;  %v375_v53 = vpack.c.bf16 %v371_v29, %v371_v29  ;;  %v2219_v44 = vld [vmem:[%s2858_s10 + $0x278] sm:$0xff]   ;;  %v1853_v38 = vld [vmem:[%s2857_s9] ss:$0 sm:$0xff] }
 0x104   :  { %v374_v51 = vmax.f32 %v370_v46, 0.0  ;;  %v377_v34 = vpack.c.bf16 %v373_v50, %v373_v50  ;;  %v1045_v41 = vcombine.high %v1043_v28, %v1043_v28  ;;  %v2676_v46 = vrot.slane %v1043_v28, %v2578_v7  ;;  %v2221_v29 = vld [vmem:[%s2858_s10 + $0x238] sm:$0xff]   ;;  %v2225_v50 = vld [vmem:[%s2858_s10 + $0x230] sm:$0xff]  }
 0x105   :  { %v376_v45 = vpack.c.bf16 %v372_v49, %v372_v49  ;;  %v2223_v49 = vld [vmem:[%s2858_s10 + $0x270] sm:$0xff]  }
 0x106   :  { %v378_v52 = vpack.c.bf16 %v374_v51, %v374_v51  ;;  %v2670_v42 = vrot.slane %v1045_v41, %v2578_v7  ;;  %v2227_v51 = vld [vmem:[%s2858_s10 + $0x268] sm:$0xff]   ;;  %v2191_v41 = vld [vmem:[%s2858_s10 + $0xb8] sm:$0xff]  }
 0x107   :  { %674 = vmatprep.mubr.bf16.mxu0 %v376_v45  ;;  %v2229_v45 = vld [vmem:[%s2858_s10 + $0x228] sm:$0xff]  }
 0x108   :  { %714 = vmatprep.mubr.bf16.mxu1 %v378_v52  ;;  %675 = vmatmul.mubr.bf16.vlgmr.msra.gmra.mxu0 %v375_v53  ;;  %v2231_v52 = vld [vmem:[%s2858_s10 + $0x260] sm:$0xff]  }
 0x109   :  { %715 = vmatmul.mubr.bf16.vlgmr.msra.gmra.mxu1 %v377_v34  ;;  %2108 = vmatpush3.bf16.msra.mxu0 %v2166_v54  ;;  %v2233_v53 = vld [vmem:[%s2858_s10 + $0x220] sm:$0xff]   ;;  %v2235_v34 = vld [vmem:[%s2858_s10 + $0x258] sm:$0xff]   ;;  %v2243_v54 = vld [vmem:[%s2858_s10 + $0x248] sm:$0xff]  }
 0x10a   :  { %1998 = vmatpush3.bf16.msra.mxu1 %v2164_v48  ;;  %2109 = vmatprep.subr.bf16.mxu0 %v2284_v9  ;;  %v2239_v48 = vld [vmem:[%s2858_s10 + $0x250] sm:$0xff]  }
 0x10b   :  { %1999 = vmatprep.subr.bf16.mxu1 %v2165_v35  ;;  %2123 = vmatprep.mubr.msk.bf16.mxu0 %vm2286_vm3, %v2284_v9  ;;  %v2241_v35 = vld [vmem:[%s2858_s10 + $0x210] sm:$0xff]  }
 0x10c   :  { %1622 = vmatprep.mubr.bf16.mxu1 %v2615_v20 }
 0x10d   :  { %2110 = vmatpush3.bf16.msra.mxu0 %v2169_v57  ;;  %v1862_v57 = vld.sshfl [vmem:[%s2848_s0 + $0x8] sm:$0x11 pattern:$0x75316420] }
 0x10e   :  { %2000 = vmatpush3.bf16.msra.mxu1 %v2167_v55  ;;  %2111 = vmatprep.subr.bf16.mxu0 %v2284_v9  ;;  %v2245_v55 = vld [vmem:[%s2858_s10 + $0x208] sm:$0xff]  }
 0x10f   :  { %2001 = vmatprep.subr.bf16.mxu1 %v2168_v56  ;;  %v2247_v56 = vld [vmem:[%s2858_s10 + $0x240] sm:$0xff]  }
 0x111   :  { %2112 = vmatpush3.bf16.msra.mxu0 %v2172_v60 }
 0x112   :  { %2002 = vmatpush3.bf16.msra.mxu1 %v2170_v58  ;;  %2113 = vmatprep.subr.bf16.mxu0 %v2284_v9  ;;  %v2249_v58 = vld [vmem:[%s2858_s10 + $0x200] sm:$0xff]  }
 0x113   :  { %2003 = vmatprep.subr.bf16.mxu1 %v2171_v59  ;;  %v1085_v59 = vcombine.high %v1862_v57, %v1862_v57 }
 0x115   :  { %2114 = vmatpush3.bf16.msra.mxu0 %v2175_v1  ;;  %v1099_v60 = vrot.slane %v1085_v59, %v2578_v7  ;;  %v2224_v59 = vld [vmem:[%s2858_s10 + $0x1b8] sm:$0xff]  }
 0x116   :  { %2004 = vmatpush3.bf16.msra.mxu1 %v2173_v61  ;;  %2115 = vmatprep.subr.bf16.mxu0 %v2284_v9  ;;  %v1092_v61 = vrot.slane %v1862_v57, %v2578_v7  ;;  %v2222_v57 = vld [vmem:[%s2858_s10 + $0x1f8] sm:$0xff]  }
 0x117   :  { %2005 = vmatprep.subr.bf16.mxu1 %v2174_v0  ;;  %v1819_v0 = vld [vmem:[%s2855_s7] ss:$0 sm:$0xff] }
 0x119   :  { %2116 = vmatpush3.bf16.msra.mxu0 %v2178_v5 }
 0x11a   :  { %2006 = vmatpush3.bf16.msra.mxu1 %v2176_v2  ;;  %2117 = vmatprep.subr.bf16.mxu0 %v2284_v9 }
 0x11b   :  { %2007 = vmatprep.subr.bf16.mxu1 %v2177_v4 }
 0x11d   :  { %2118 = vmatpush3.bf16.msra.mxu0 %v2181_v10 }
 0x11e   :  { %2008 = vmatpush3.bf16.msra.mxu1 %v2179_v6  ;;  %2119 = vmatprep.subr.bf16.mxu0 %v2284_v9 }
 0x11f   :  { %2009 = vmatprep.subr.bf16.mxu1 %v2180_v8 }
 0x121   :  { %2120 = vmatpush3.bf16.msra.mxu0 %v2184_v14 }
 0x122   :  { %2010 = vmatpush3.bf16.msra.mxu1 %v2182_v11  ;;  %2121 = vmatprep.subr.bf16.mxu0 %v2284_v9  ;;  %v2194_v9 = vld [vmem:[%s2858_s10 + $0x168] sm:$0xff]  }
 0x123   :  { %2011 = vmatprep.subr.bf16.mxu1 %v2183_v12 }
 0x125   :  { %2122 = vmatpush3.bf16.msra.mxu0 %v2187_v18 }
 0x126   :  { %2012 = vmatpush3.bf16.msra.mxu1 %v2185_v15  ;;  %2019 = vmatprep.subr.bf16.mxu0 %v2189_v22 }
 0x127   :  { %2041 = vmatprep.subr.bf16.mxu1 %v2186_v17 }
 0x129   :  { %1623 = vmatmul.mubr.bf16.vlgmr.msra.gmra.mxu1 %v2611_v19 }
 0x12a   :  { %2042 = vmatpush3.bf16.msra.mxu1 %v2188_v21  ;;  %1702 = vmatprep.mubr.bf16.mxu1 %v2670_v42 }
 0x12b   :  { %2043 = vmatprep.subr.bf16.mxu1 %v2190_v23 }
 0x12e   :  { %2044 = vmatpush3.bf16.msra.mxu1 %v2192_v24 }
 0x12f   :  { %2045 = vmatprep.subr.bf16.mxu1 %v2194_v9 }
 0x132   :  { %2046 = vmatpush3.bf16.msra.mxu1 %v2196_v25 }
 0x133   :  { %2047 = vmatprep.subr.bf16.mxu1 %v2198_v26 }
 0x136   :  { %2048 = vmatpush3.bf16.msra.mxu1 %v2200_v27 }
 0x137   :  { %2049 = vmatprep.subr.bf16.mxu1 %v2202_v30 }
 0x13a   :  { %2050 = vmatpush3.bf16.msra.mxu1 %v2204_v31 }
 0x13b   :  { %2051 = vmatprep.subr.bf16.mxu1 %v2206_v32 }
 0x13e   :  { %2052 = vmatpush3.bf16.msra.mxu1 %v2208_v33 }
 0x13f   :  { %2053 = vmatprep.subr.bf16.mxu1 %v2210_v36  ;;  %v1852_v36 = vld [vmem:[%s2856_s8] ss:$0 sm:$0xff] }
 0x142   :  { %2054 = vmatpush3.bf16.msra.mxu1 %v2212_v37 }
 0x143   :  { %2055 = vmatprep.subr.bf16.mxu1 %v2214_v39 }
 0x146   :  { %2056 = vmatpush3.bf16.msra.mxu1 %v2216_v40 }
 0x147   :  { %2085 = vmatprep.subr.bf16.mxu1 %v2219_v44  ;;  %v1076_v44 = vcombine.high %v2615_v20, %v2615_v20  ;;  %v2199_v20 = vld [vmem:[%s2858_s10 + $0xa8] sm:$0xff]  }
 0x149   :  { %1703 = vmatmul.mubr.bf16.vlgmr.msra.gmra.mxu1 %v2676_v46 }
 0x14a   :  { %2086 = vmatpush3.bf16.msra.mxu1 %v2221_v29  ;;  %1782 = vmatprep.mubr.bf16.mxu1 %v1099_v60  ;;  %v1077_v60 = vcombine.high %v2670_v42, %v2670_v42  ;;  %v2232_v42 = vld [vmem:[%s2858_s10 + $0x1a8] sm:$0xff]  }
 0x14b   :  { %2087 = vmatprep.subr.bf16.mxu1 %v2223_v49  ;;  %v2193_v49 = vld [vmem:[%s2858_s10 + $0xf0] sm:$0xff]  }
 0x14e   :  { %2088 = vmatpush3.bf16.msra.mxu1 %v2225_v50  ;;  %v2195_v50 = vld [vmem:[%s2858_s10 + $0xb0] sm:$0xff]  }
 0x14f   :  { %2089 = vmatprep.subr.bf16.mxu1 %v2227_v51  ;;  %v2197_v51 = vld [vmem:[%s2858_s10 + $0xe8] sm:$0xff]  }
 0x152   :  { %2090 = vmatpush3.bf16.msra.mxu1 %v2229_v45  ;;  %v2201_v45 = vld [vmem:[%s2858_s10 + $0xe0] sm:$0xff]  }
 0x153   :  { %2091 = vmatprep.subr.bf16.mxu1 %v2231_v52  ;;  %v2203_v52 = vld [vmem:[%s2858_s10 + $0xa0] sm:$0xff]  }
 0x156   :  { %2092 = vmatpush3.bf16.msra.mxu1 %v2233_v53  ;;  %v2205_v53 = vld [vmem:[%s2858_s10 + $0xd8] sm:$0xff]  }
 0x157   :  { %2093 = vmatprep.subr.bf16.mxu1 %v2235_v34  ;;  %v2207_v34 = vld [vmem:[%s2858_s10 + $0x98] sm:$0xff]  }
 0x15a   :  { %2094 = vmatpush3.bf16.msra.mxu1 %v2237_v47  ;;  %v2209_v47 = vld [vmem:[%s2858_s10 + $0xd0] sm:$0xff]  }
 0x15b   :  { %2095 = vmatprep.subr.bf16.mxu1 %v2239_v48  ;;  %v2211_v48 = vld [vmem:[%s2858_s10 + $0x90] sm:$0xff]  }
 0x15e   :  { %2096 = vmatpush3.bf16.msra.mxu1 %v2241_v35  ;;  %v2213_v35 = vld [vmem:[%s2858_s10 + $0xc8] sm:$0xff]  }
 0x15f   :  { %2097 = vmatprep.subr.bf16.mxu1 %v2243_v54  ;;  %v2215_v54 = vld [vmem:[%s2858_s10 + $0x88] sm:$0xff]  }
 0x162   :  { %2098 = vmatpush3.bf16.msra.mxu1 %v2245_v55  ;;  %v2217_v55 = vld [vmem:[%s2858_s10 + $0xc0] sm:$0xff]  }
 0x163   :  { %2099 = vmatprep.subr.bf16.mxu1 %v2247_v56  ;;  %v2220_v56 = vld [vmem:[%s2858_s10 + $0x80] sm:$0xff]  }
 0x166   :  { %2100 = vmatpush3.bf16.msra.mxu1 %v2249_v58  ;;  %v1074_v58 = vcombine.high %v2611_v19, %v2611_v19  ;;  %v2230_v19 = vld [vmem:[%s2858_s10 + $0x1e8] sm:$0xff]  }
 0x169   :  { %1783 = vmatmul.mubr.bf16.vlgmr.msra.gmra.mxu1 %v1092_v61  ;;  %v2226_v61 = vld [vmem:[%s2858_s10 + $0x1f0] sm:$0xff]  }
 0x1c8   :  { %v1960_v62 = vpop.f32.mrf.mxu0 }
 0x1c9   :  { %v1982_v63 = vpop.f32.mrf.mxu1 }
 0x1ca   :  { %v1961_v1 = vpop.f32.mrf.mxu0 }
 0x1cb   :  { %v1962_v2 = vadd.f32 %v1961_v1, %v1960_v62  ;;  %v1983_v3 = vpop.f32.mrf.mxu1  ;;  %v2228_v62 = vld [vmem:[%s2858_s10 + $0x1b0] sm:$0xff]   ;;  %v2238_v1 = vld [vmem:[%s2858_s10 + $0x1d8] sm:$0xff]  }
 0x1cc   :  { %v1963_v4 = vpop.f32.mrf.mxu0  ;;  %v1984_v6 = vadd.f32 %v1983_v3, %v1982_v63  ;;  %v2234_v63 = vld [vmem:[%s2858_s10 + $0x1e0] sm:$0xff]   ;;  %v2242_v3 = vld [vmem:[%s2858_s10 + $0x1d0] sm:$0xff]  }
 0x1cd   :  { %v677_v5 = vadd.f32 %v1962_v2, %v1819_v0  ;;  %v1985_v8 = vpop.f32.mrf.mxu1  ;;  %v2236_v0 = vld [vmem:[%s2858_s10 + $0x1a0] sm:$0xff]   ;;  %v2240_v2 = vld [vmem:[%s2858_s10 + $0x198] sm:$0xff]   ;;  %v2244_v4 = vld [vmem:[%s2858_s10 + $0x190] sm:$0xff]  }
 0x1ce   :  { %v1964_v10 = vpop.f32.mrf.mxu0  ;;  %v2250_v8 = vld [vmem:[%s2858_s10 + $0x1c0] sm:$0xff]  }
 0x1cf   :  { %v717_v11 = vadd.f32 %v1984_v6, %v677_v5  ;;  %v1986_v43 = vpop.f32.mrf.mxu1  ;;  %v2246_v5 = vld [vmem:[%s2858_s10 + $0x1c8] sm:$0xff]   ;;  %v2251_v10 = vld [vmem:[%s2858_s10 + $0x180] sm:$0xff]  }
 0x1d0   :  { %v2248_v6 = vld [vmem:[%s2858_s10 + $0x188] sm:$0xff]  }
 0x1d1   :  { %v722_v7 = vsel %vm233_vm2, %v717_v11, 0.0 }
 0x1d2   :  { %v723_v12 = vrot.slane %v722_v7, 4 }
 0x1d4   :  { %v724_v13 = vadd.f32 %v723_v12, %v722_v7 }
 0x1d6   :  { %v725_v14 = vrot.slane %v724_v13, 2 }
 0x1d8   :  { %v726_v15 = vadd.f32 %v725_v14, %v724_v13 }
 0x1da   :  { %v727_v16 = vrot.slane %v726_v15, 1 }
 0x1dc   :  { %v728_v17 = vadd.f32 %v727_v16, %v726_v15 }
 0x1de   :  { %v729_v18 = vmul.f32 0.5, %v728_v17 }
 0x1e0   :  { %v730_v21 = vsub.f32 %v717_v11, %v729_v18  ;;  %v1075_v11 = vcombine.high %v2676_v46, %v2676_v46 }
 0x1e2   :  { %v731_v22 = vmul.f32 %v730_v21, %v730_v21 }
 0x1e4   :  { %v732_v23 = vsel %vm233_vm2, %v731_v22, 0.0 }
 0x1e5   :  { %v733_v24 = vrot.slane %v732_v23, 4 }
 0x1e7   :  { %v734_v9 = vadd.f32 %v733_v24, %v732_v23 }
 0x1e9   :  { %v735_v25 = vrot.slane %v734_v9, 2  ;;  %v2013_v43 = vpop.f32.mrf.mxu1 }
 0x1eb   :  { %v736_v26 = vadd.f32 %v735_v25, %v734_v9  ;;  %v2014_v7 = vpop.f32.mrf.mxu1 }
 0x1ec   :  { %v2015_v12 = vadd.f32 %v2014_v7, %v2013_v43 }
 0x1ed   :  { %v737_v27 = vrot.slane %v736_v26, 1  ;;  %v2016_v13 = vpop.f32.mrf.mxu1 }
 0x1ef   :  { %v738_v30 = vadd.f32 %v737_v27, %v736_v26  ;;  %v2017_v14 = vpop.f32.mrf.mxu1 }
 0x1f1   :  { %v739_v31 = vmul.f32 0.5, %v738_v30 }
 0x1f3   :  { %v740_v32 = vadd.f32 1e-05, %v739_v31 }
 0x1f5   :  { %2260 = vrsqrt.f32 %v740_v32 }
 0x202   :  { %v2261_v33 = vpop.eup %2260 }
 0x203   :  { %v742_v37 = vmul.f32 %v2261_v33, %v730_v21 }
 0x205   :  { %v750_v39 = vmul.f32 %v1852_v36, %v742_v37 }
 0x207   :  { %v758_v28 = vadd.f32 %v1853_v38, %v750_v39 }
 0x209   :  { %v759_v40 = vmax.f32 %v758_v28, 0.0  ;;  %v2057_v15 = vpop.f32.mrf.mxu1 }
 0x20b   :  { %v922_v29 = vpack.c.bf16 %v759_v40, %v759_v40  ;;  %v2058_v16 = vpop.f32.mrf.mxu1 }
 0x20c   :  { %v2059_v17 = vadd.f32 %v2058_v16, %v2057_v15 }
 0x20d   :  { %2124 = vmatmul.mubr.bf16.vlgmr.msra.gmra.mxu0 %v922_v29  ;;  %v2060_v18 = vpop.f32.mrf.mxu1 }
 0x20e   :  { %2020 = vmatpush3.bf16.msra.mxu0 %v2191_v41  ;;  %1662 = vmatprep.mubr.bf16.mxu0 %v1076_v44 }
 0x20f   :  { %2021 = vmatprep.subr.bf16.mxu0 %v2193_v49  ;;  %v2061_v21 = vpop.f32.mrf.mxu1 }
 0x212   :  { %2022 = vmatpush3.bf16.msra.mxu0 %v2195_v50 }
 0x213   :  { %2023 = vmatprep.subr.bf16.mxu0 %v2197_v51  ;;  %v1943_v51 = vld [vmem:[%s2859_s11] ss:$0 sm:$0xff] }
 0x216   :  { %2024 = vmatpush3.bf16.msra.mxu0 %v2199_v20 }
 0x217   :  { %2025 = vmatprep.subr.bf16.mxu0 %v2201_v45 }
 0x21a   :  { %2026 = vmatpush3.bf16.msra.mxu0 %v2203_v52 }
 0x21b   :  { %2027 = vmatprep.subr.bf16.mxu0 %v2205_v53 }
 0x21e   :  { %2028 = vmatpush3.bf16.msra.mxu0 %v2207_v34 }
 0x21f   :  { %2029 = vmatprep.subr.bf16.mxu0 %v2209_v47 }
 0x222   :  { %2030 = vmatpush3.bf16.msra.mxu0 %v2211_v48 }
 0x223   :  { %2031 = vmatprep.subr.bf16.mxu0 %v2213_v35 }
 0x226   :  { %2032 = vmatpush3.bf16.msra.mxu0 %v2215_v54 }
 0x227   :  { %2033 = vmatprep.subr.bf16.mxu0 %v2217_v55 }
 0x229   :  { %v2101_v22 = vpop.f32.mrf.mxu1 }
 0x22a   :  { %2034 = vmatpush3.bf16.msra.mxu0 %v2220_v56 }
 0x22b   :  { %2063 = vmatprep.subr.bf16.mxu0 %v2222_v57  ;;  %v2102_v23 = vpop.f32.mrf.mxu1 }
 0x22c   :  { %v2103_v24 = vadd.f32 %v2102_v23, %v2101_v22 }
 0x22d   :  { %1663 = vmatmul.mubr.bf16.vlgmr.msra.gmra.mxu0 %v1074_v58  ;;  %v2104_v9 = vpop.f32.mrf.mxu1 }
 0x22e   :  { %2064 = vmatpush3.bf16.msra.mxu0 %v2224_v59  ;;  %1742 = vmatprep.mubr.bf16.mxu0 %v1077_v60 }
 0x22f   :  { %2065 = vmatprep.subr.bf16.mxu0 %v2226_v61  ;;  %v2105_v25 = vpop.f32.mrf.mxu1 }
 0x232   :  { %2066 = vmatpush3.bf16.msra.mxu0 %v2228_v62 }
 0x233   :  { %2067 = vmatprep.subr.bf16.mxu0 %v2230_v19 }
 0x236   :  { %2068 = vmatpush3.bf16.msra.mxu0 %v2232_v42 }
 0x237   :  { %2069 = vmatprep.subr.bf16.mxu0 %v2234_v63 }
 0x23a   :  { %2070 = vmatpush3.bf16.msra.mxu0 %v2236_v0 }
 0x23b   :  { %2071 = vmatprep.subr.bf16.mxu0 %v2238_v1 }
 0x23e   :  { %2072 = vmatpush3.bf16.msra.mxu0 %v2240_v2 }
 0x23f   :  { %2073 = vmatprep.subr.bf16.mxu0 %v2242_v3 }
 0x242   :  { %2074 = vmatpush3.bf16.msra.mxu0 %v2244_v4 }
 0x243   :  { %2075 = vmatprep.subr.bf16.mxu0 %v2246_v5 }
 0x246   :  { %2076 = vmatpush3.bf16.msra.mxu0 %v2248_v6 }
 0x247   :  { %2077 = vmatprep.subr.bf16.mxu0 %v2250_v8 }
 0x24a   :  { %2078 = vmatpush3.bf16.msra.mxu0 %v2251_v10 }
 0x24d   :  { %1743 = vmatmul.mubr.bf16.vlgmr.msra.gmra.mxu0 %v1075_v11 }
 0x2cd   :  { %v1021_v26 = vpop.f32.mrf.mxu0 }
 0x2ce   :  { %v1625_v33 = vadd.f32 %v2015_v12, %v1021_v26 }
 0x2cf   :  { %v2125_v27 = vpop.f32.mrf.mxu0 }
 0x2d1   :  { %v1024_v46 = vpop.f32.mrf.mxu0 }
 0x2d3   :  { %v2126_v30 = vpop.f32.mrf.mxu0 }
 0x2ed   :  { %v2035_v31 = vpop.f32.mrf.mxu0 }
 0x2ef   :  { %v2036_v32 = vpop.f32.mrf.mxu0 }
 0x2f0   :  { %v2037_v36 = vadd.f32 %v2036_v32, %v2035_v31 }
 0x2f1   :  { %v2038_v37 = vpop.f32.mrf.mxu0 }
 0x2f2   :  { %v1665_v38 = vadd.f32 %v2037_v36, %v1625_v33 }
 0x2f3   :  { %v2039_v39 = vpop.f32.mrf.mxu0 }
 0x2f4   :  { %v1705_v28 = vadd.f32 %v2059_v17, %v1665_v38 }
 0x30d   :  { %v2079_v40 = vpop.f32.mrf.mxu0 }
 0x30f   :  { %v2080_v41 = vpop.f32.mrf.mxu0 }
 0x310   :  { %v2081_v44 = vadd.f32 %v2080_v41, %v2079_v40 }
 0x311   :  { %v2082_v29 = vpop.f32.mrf.mxu0 }
 0x312   :  { %v1745_v49 = vadd.f32 %v2081_v44, %v1705_v28 }
 0x313   :  { %v2083_v50 = vpop.f32.mrf.mxu0 }
 0x314   :  { %v1785_v20 = vadd.f32 %v2103_v24, %v1745_v49 }
 0x316   :  { %v1797_v45 = vadd.f32 %v1943_v51, %v1785_v20 }
 0x318   :  { %1798 = vst [vmem:[#allocation2] sm:$0x3] %v1797_v45 }
 0x319   :  { %2273 = shalt.err (!%p2270_p4)
}
 0x31a   :  { %1808 = dma.vmem_to_hbm [thread:$0]  %s1806_s15, 32, %s2860_s12, [#allocation3]  }
 0x31b   :  { %2282 = dma.done.wait [#allocation3], 32  }
 0x31c   :  { %2283 = vsyncadd [#allocation3], 4294967264 }
 0x31d   :  { %1812 = vsyncpa [#allocation3], 1 }

</bundles_post_ra>
